<compile_context>
chip_gen: v7x
topology: tpu7x:2x2x1
jax: 0.10.0
libtpu: 0.0.40
codegen_flags: <defaults>
</compile_context>

<pallas_src>
import functools

import jax
import jax.numpy as jnp
from jax.experimental import pallas as pl
from jax.experimental.pallas import tpu as pltpu


def _branch_kernel(xt_ref, w1_ref, wr_ref, b_ref, o_ref, *, K, W):
    """Fused stack of L x (VALID conv + bias + ReLU) for one or two branches.

    xt_ref: (branches, K*K, M)          layer-1 im2col of the flat input canvas
    w1_ref: (branches, F, K*K)          layer-1 weights, (cout, tap)
    wr_ref: (branches, L-1, F, K*K*F)   layer 2..L weights, (cout, tap*cin)
    b_ref : (branches, L, F, 1)         biases as columns
    o_ref : (branches, F, M)            final activation canvas (valid region top-left)
    """
    branches, F, M = o_ref.shape
    num_layers = b_ref.shape[1]
    taps = [kh * W + kw for kh in range(K) for kw in range(K)]

    def shifted(a, off):
        # y[:, p] = a[:, p + off]  (XLU lane rotate).  The wrapped tail only lands
        # in the garbage margin of the canvas, never in a valid output position.
        if off == 0:
            return a
        return pltpu.roll(a, M - off, 1)

    for br in range(branches):                                # static unroll
        # ---- layer 1 (Cin=1): patches were pre-built in the wrapper ----
        acc = jnp.dot(w1_ref[br], xt_ref[br], preferred_element_type=jnp.float32)
        act = jnp.maximum(acc + b_ref[br, 0], 0.0)            # (F, M), lane-dense

        # ---- layers 2..L: sublane-stacked im2col + one MXU matmul each ----
        for l in range(num_layers - 1):                       # static unroll
            patches = jnp.concatenate([shifted(act, off) for off in taps], axis=0)
            acc = jnp.dot(wr_ref[br, l], patches, preferred_element_type=jnp.float32)
            act = jnp.maximum(acc + b_ref[br, l + 1], 0.0)

        o_ref[br] = act.astype(o_ref.dtype)                   # unmasked (F, M) store


def _prep_branch(branch, K, fmaps):
    """PyTorch-style per-layer (w HWIO, b) params -> transposed im2col matrices."""
    w1, _ = branch[0]                                                    # (K, K, 1, F)
    w1m = w1.reshape(K * K, fmaps).T                                     # (F, K*K)
    wrm = jnp.stack([w.reshape(K * K * fmaps, fmaps).T for w, _ in branch[1:]], 0)
    bs = jnp.stack([b for _, b in branch], 0).reshape(len(branch), fmaps, 1)
    return w1m, wrm, bs


def _branches_per_step():
    """2 on single-TC chips (fuse both branches into one grid step), 1 on v7x."""
    try:
        kind = jax.devices()[0].device_kind.lower()
    except Exception:
        return 2
    return 1 if ("v7" in kind or "tpu7" in kind) else 2


@functools.partial(jax.jit, static_argnames=("branches_per_step",))
def _cnn_forward_impl(params, x_nchw, y_nchw, *, branches_per_step):
    branch1, branch2 = params["branch1"], params["branch2"]
    L = len(branch1)
    K = branch1[0][0].shape[0]
    F = branch1[0][0].shape[-1]
    N, _, H, W = x_nchw.shape
    Ho = H - L * (K - 1)
    Wo = W - L * (K - 1)
    M = N * H * W
    taps = [kh * W + kw for kh in range(K) for kw in range(K)]

    # Layer-1 im2col on the flat canvas (Cin=1 -> taps are shifted copies of the
    # input).  Tiny, built once by XLA in the wrapper.
    def canvas_taps(img):
        flat = img.astype(jnp.float32).reshape(1, M)
        return jnp.concatenate([jnp.roll(flat, -off, axis=1) for off in taps], axis=0)

    xtaps = jnp.stack([canvas_taps(x_nchw), canvas_taps(y_nchw)], axis=0)   # (2, K*K, M)

    p1 = _prep_branch(branch1, K, F)
    p2 = _prep_branch(branch2, K, F)
    w1 = jnp.stack([p1[0], p2[0]], axis=0)     # (2, F, K*K)
    wr = jnp.stack([p1[1], p2[1]], axis=0)     # (2, L-1, F, K*K*F)
    bs = jnp.stack([p1[2], p2[2]], axis=0)     # (2, L, F, 1)

    bps = branches_per_step
    nsteps = 2 // bps
    kernel = functools.partial(_branch_kernel, K=K, W=W)

    # NOTE: everything stays VMEM-resident (a few 100 KB here).  If N/H/W grow,
    # add a grid axis over batch and set vmem_limit_bytes before the live set
    # approaches the 32 MiB default scoped VMEM (v7x physical VMEM is 64 MiB).
    out = pl.pallas_call(
        kernel,
        out_shape=jax.ShapeDtypeStruct((2, F, M), jnp.float32),
        grid=(nsteps,),
        in_specs=[
            pl.BlockSpec((bps, K * K, M), lambda s: (s, 0, 0)),
            pl.BlockSpec((bps, F, K * K), lambda s: (s, 0, 0)),
            pl.BlockSpec((bps, L - 1, F, K * K * F), lambda s: (s, 0, 0, 0)),
            pl.BlockSpec((bps, L, F, 1), lambda s: (s, 0, 0, 0)),
        ],
        out_specs=pl.BlockSpec((bps, F, M), lambda s: (s, 0, 0)),
        compiler_params=pltpu.CompilerParams(
            dimension_semantics=("parallel",)),   # one branch per TensorCore on v7x
    )(xtaps, w1, wr, bs)

    def to_nchw(o):   # (F, M) canvas -> NCHW valid region (top-left anchored)
        o = o.reshape(F, N, H, W)[:, :, :Ho, :Wo]
        return jnp.transpose(o, (1, 0, 2, 3)).astype(x_nchw.dtype)

    return to_nchw(out[0]), to_nchw(out[1])


def cnn_forward(params, x_nchw, y_nchw):
    """Matches CNN.forward: two independent stacks of 5 x (conv + ReLU). NCHW in/out."""
    return _cnn_forward_impl(params, x_nchw, y_nchw,
                             branches_per_step=_branches_per_step())


def init_conv_params(key, cin, cout, k):
    """Deterministic init mirroring nn.Conv2d default (uniform +- 1/sqrt(fan_in))."""
    kw, kb = jax.random.split(key)
    bound = 1.0 / float(cin * k * k) ** 0.5
    w = jax.random.uniform(kw, (k, k, cin, cout), jnp.float32, -bound, bound)
    b = jax.random.uniform(kb, (cout,), jnp.float32, -bound, bound)
    return w, b


def make_cnn_params(key, fmaps, kernel_size):
    keys = jax.random.split(key, 10)
    branch1, branch2 = [], []
    for i in range(5):
        branch1.append(init_conv_params(keys[i], 1 if i == 0 else fmaps, fmaps, kernel_size))
    for i in range(5):
        branch2.append(init_conv_params(keys[5 + i], 1 if i == 0 else fmaps, fmaps, kernel_size))
    return {"branch1": branch1, "branch2": branch2}


def _ref_conv_relu(x_nchw, w_kkio, b):
    w_oihw = jnp.transpose(w_kkio, (3, 2, 0, 1))
    out = jax.lax.conv_general_dilated(
        x_nchw, w_oihw, window_strides=(1, 1), padding="VALID",
        dimension_numbers=("NCHW", "OIHW", "NCHW"))
    return jax.nn.relu(out + b[None, :, None, None])


def _ref_forward(params, x, y):
    for w, b in params["branch1"]:
        x = _ref_conv_relu(x, w, b)
    for w, b in params["branch2"]:
        y = _ref_conv_relu(y, w, b)
    return x, y


if __name__ == "__main__":
    fmaps, kernel_size = 8, 3
    batch, spatial = 2, 16

    key = jax.random.PRNGKey(0)
    kx, ky, kp = jax.random.split(key, 3)
    x = jax.random.normal(kx, (batch, 1, spatial, spatial), jnp.float32)
    y = jax.random.normal(ky, (batch, 1, spatial, spatial), jnp.float32)
    params = make_cnn_params(kp, fmaps, kernel_size)

    out_x, out_y = cnn_forward(params, x, y)
    out_x = jax.block_until_ready(out_x)
    out_y = jax.block_until_ready(out_y)

    # correctness check against plain-JAX reference conv
    ref_x, ref_y = _ref_forward(params, x, y)
    out_hw = spatial - 5 * (kernel_size - 1)
    assert out_x.shape == (batch, fmaps, out_hw, out_hw)
    assert out_y.shape == (batch, fmaps, out_hw, out_hw)
    assert jnp.allclose(out_x, ref_x, atol=1e-4, rtol=1e-4)
    assert jnp.allclose(out_y, ref_y, atol=1e-4, rtol=1e-4)

    print("KERNEL_OK")
</pallas_src>

<mosaic_0001>
module attributes {stable_mosaic.version = 11 : i64} {
  func.func @_branch_kernel(%arg0: i32, %arg1: memref<2x9x512xf32, #tpu.memory_space<vmem>>, %arg2: memref<2x8x9xf32, #tpu.memory_space<vmem>>, %arg3: memref<2x4x8x72xf32, #tpu.memory_space<vmem>>, %arg4: memref<2x5x8x1xf32, #tpu.memory_space<vmem>>, %arg5: memref<2x8x512xf32, #tpu.memory_space<vmem>>) attributes {dimension_semantics = [#tpu.dimension_semantics<parallel>], iteration_bounds = array<i64: 1>, scalar_prefetch = 0 : i64, scratch_operands = 0 : i64, tpu.core_type = #tpu.core_type<tc>, window_params = [{transform_indices = @transform_0, window_bounds = array<i64: 2, 9, 512>}, {transform_indices = @transform_1, window_bounds = array<i64: 2, 8, 9>}, {transform_indices = @transform_2, window_bounds = array<i64: 2, 4, 8, 72>}, {transform_indices = @transform_3, window_bounds = array<i64: 2, 5, 8, 1>}, {transform_indices = @transform_4, window_bounds = array<i64: 2, 8, 512>}]} {
    %c0 = arith.constant 0 : index
    %c0_0 = arith.constant 0 : index
    %c0_1 = arith.constant 0 : index
    %0 = vector.load %arg2[%c0, %c0_0, %c0_1] : memref<2x8x9xf32, #tpu.memory_space<vmem>>, vector<1x8x9xf32>
    %1 = vector.shape_cast %0 : vector<1x8x9xf32> to vector<8x9xf32>
    %c0_2 = arith.constant 0 : index
    %c0_3 = arith.constant 0 : index
    %c0_4 = arith.constant 0 : index
    %2 = vector.load %arg1[%c0_2, %c0_3, %c0_4] : memref<2x9x512xf32, #tpu.memory_space<vmem>>, vector<1x9x512xf32>
    %3 = vector.shape_cast %2 : vector<1x9x512xf32> to vector<9x512xf32>
    %cst = arith.constant dense<0.000000e+00> : vector<8x512xf32>
    %4 = tpu.matmul %1, %3, %cst {dimension_numbers = #tpu.dot_dimension_numbers<[1], [0], [0], [1], [0, 0, 1, 1], [], []>} : vector<8x9xf32>, vector<9x512xf32>, vector<8x512xf32> -> vector<8x512xf32>
    %c0_5 = arith.constant 0 : index
    %c0_6 = arith.constant 0 : index
    %c0_7 = arith.constant 0 : index
    %c0_8 = arith.constant 0 : index
    %5 = vector.load %arg4[%c0_5, %c0_6, %c0_7, %c0_8] : memref<2x5x8x1xf32, #tpu.memory_space<vmem>>, vector<1x1x8x1xf32>
    %6 = vector.shape_cast %5 : vector<1x1x8x1xf32> to vector<8x1xf32>
    %7 = vector.broadcast %6 : vector<8x1xf32> to vector<8x512xf32>
    %8 = arith.addf %4, %7 : vector<8x512xf32>
    %cst_9 = arith.constant 0.000000e+00 : f32
    %9 = vector.broadcast %cst_9 : f32 to vector<8x512xf32>
    %10 = arith.maximumf %8, %9 : vector<8x512xf32>
    %c511_i32 = arith.constant 511 : i32
    %11 = tpu.dynamic_rotate %10 by %c511_i32 dim 1 : vector<8x512xf32>, i32 -> vector<8x512xf32>
    %c510_i32 = arith.constant 510 : i32
    %12 = tpu.dynamic_rotate %10 by %c510_i32 dim 1 : vector<8x512xf32>, i32 -> vector<8x512xf32>
    %c496_i32 = arith.constant 496 : i32
    %13 = tpu.dynamic_rotate %10 by %c496_i32 dim 1 : vector<8x512xf32>, i32 -> vector<8x512xf32>
    %c495_i32 = arith.constant 495 : i32
    %14 = tpu.dynamic_rotate %10 by %c495_i32 dim 1 : vector<8x512xf32>, i32 -> vector<8x512xf32>
    %c494_i32 = arith.constant 494 : i32
    %15 = tpu.dynamic_rotate %10 by %c494_i32 dim 1 : vector<8x512xf32>, i32 -> vector<8x512xf32>
    %c480_i32 = arith.constant 480 : i32
    %16 = tpu.dynamic_rotate %10 by %c480_i32 dim 1 : vector<8x512xf32>, i32 -> vector<8x512xf32>
    %c479_i32 = arith.constant 479 : i32
    %17 = tpu.dynamic_rotate %10 by %c479_i32 dim 1 : vector<8x512xf32>, i32 -> vector<8x512xf32>
    %c478_i32 = arith.constant 478 : i32
    %18 = tpu.dynamic_rotate %10 by %c478_i32 dim 1 : vector<8x512xf32>, i32 -> vector<8x512xf32>
    %19 = tpu.concatenate %10, %11, %12, %13, %14, %15, %16, %17, %18 in 0 : vector<8x512xf32>, vector<8x512xf32>, vector<8x512xf32>, vector<8x512xf32>, vector<8x512xf32>, vector<8x512xf32>, vector<8x512xf32>, vector<8x512xf32>, vector<8x512xf32> -> vector<72x512xf32>
    %c0_10 = arith.constant 0 : index
    %c0_11 = arith.constant 0 : index
    %c0_12 = arith.constant 0 : index
    %c0_13 = arith.constant 0 : index
    %20 = vector.load %arg3[%c0_10, %c0_11, %c0_12, %c0_13] : memref<2x4x8x72xf32, #tpu.memory_space<vmem>>, vector<1x1x8x72xf32>
    %21 = vector.shape_cast %20 : vector<1x1x8x72xf32> to vector<8x72xf32>
    %cst_14 = arith.constant dense<0.000000e+00> : vector<8x512xf32>
    %22 = tpu.matmul %21, %19, %cst_14 {dimension_numbers = #tpu.dot_dimension_numbers<[1], [0], [0], [1], [0, 0, 1, 1], [], []>} : vector<8x72xf32>, vector<72x512xf32>, vector<8x512xf32> -> vector<8x512xf32>
    %c0_15 = arith.constant 0 : index
    %c1 = arith.constant 1 : index
    %c0_16 = arith.constant 0 : index
    %c0_17 = arith.constant 0 : index
    %23 = vector.load %arg4[%c0_15, %c1, %c0_16, %c0_17] : memref<2x5x8x1xf32, #tpu.memory_space<vmem>>, vector<1x1x8x1xf32>
    %24 = vector.shape_cast %23 : vector<1x1x8x1xf32> to vector<8x1xf32>
    %25 = vector.broadcast %24 : vector<8x1xf32> to vector<8x512xf32>
    %26 = arith.addf %22, %25 : vector<8x512xf32>
    %cst_18 = arith.constant 0.000000e+00 : f32
    %27 = vector.broadcast %cst_18 : f32 to vector<8x512xf32>
    %28 = arith.maximumf %26, %27 : vector<8x512xf32>
    %c511_i32_19 = arith.constant 511 : i32
    %29 = tpu.dynamic_rotate %28 by %c511_i32_19 dim 1 : vector<8x512xf32>, i32 -> vector<8x512xf32>
    %c510_i32_20 = arith.constant 510 : i32
    %30 = tpu.dynamic_rotate %28 by %c510_i32_20 dim 1 : vector<8x512xf32>, i32 -> vector<8x512xf32>
    %c496_i32_21 = arith.constant 496 : i32
    %31 = tpu.dynamic_rotate %28 by %c496_i32_21 dim 1 : vector<8x512xf32>, i32 -> vector<8x512xf32>
    %c495_i32_22 = arith.constant 495 : i32
    %32 = tpu.dynamic_rotate %28 by %c495_i32_22 dim 1 : vector<8x512xf32>, i32 -> vector<8x512xf32>
    %c494_i32_23 = arith.constant 494 : i32
    %33 = tpu.dynamic_rotate %28 by %c494_i32_23 dim 1 : vector<8x512xf32>, i32 -> vector<8x512xf32>
    %c480_i32_24 = arith.constant 480 : i32
    %34 = tpu.dynamic_rotate %28 by %c480_i32_24 dim 1 : vector<8x512xf32>, i32 -> vector<8x512xf32>
    %c479_i32_25 = arith.constant 479 : i32
    %35 = tpu.dynamic_rotate %28 by %c479_i32_25 dim 1 : vector<8x512xf32>, i32 -> vector<8x512xf32>
    %c478_i32_26 = arith.constant 478 : i32
    %36 = tpu.dynamic_rotate %28 by %c478_i32_26 dim 1 : vector<8x512xf32>, i32 -> vector<8x512xf32>
    %37 = tpu.concatenate %28, %29, %30, %31, %32, %33, %34, %35, %36 in 0 : vector<8x512xf32>, vector<8x512xf32>, vector<8x512xf32>, vector<8x512xf32>, vector<8x512xf32>, vector<8x512xf32>, vector<8x512xf32>, vector<8x512xf32>, vector<8x512xf32> -> vector<72x512xf32>
    %c0_27 = arith.constant 0 : index
    %c1_28 = arith.constant 1 : index
    %c0_29 = arith.constant 0 : index
    %c0_30 = arith.constant 0 : index
    %38 = vector.load %arg3[%c0_27, %c1_28, %c0_29, %c0_30] : memref<2x4x8x72xf32, #tpu.memory_space<vmem>>, vector<1x1x8x72xf32>
    %39 = vector.shape_cast %38 : vector<1x1x8x72xf32> to vector<8x72xf32>
    %cst_31 = arith.constant dense<0.000000e+00> : vector<8x512xf32>
    %40 = tpu.matmul %39, %37, %cst_31 {dimension_numbers = #tpu.dot_dimension_numbers<[1], [0], [0], [1], [0, 0, 1, 1], [], []>} : vector<8x72xf32>, vector<72x512xf32>, vector<8x512xf32> -> vector<8x512xf32>
    %c0_32 = arith.constant 0 : index
    %c2 = arith.constant 2 : index
    %c0_33 = arith.constant 0 : index
    %c0_34 = arith.constant 0 : index
    %41 = vector.load %arg4[%c0_32, %c2, %c0_33, %c0_34] : memref<2x5x8x1xf32, #tpu.memory_space<vmem>>, vector<1x1x8x1xf32>
    %42 = vector.shape_cast %41 : vector<1x1x8x1xf32> to vector<8x1xf32>
    %43 = vector.broadcast %42 : vector<8x1xf32> to vector<8x512xf32>
    %44 = arith.addf %40, %43 : vector<8x512xf32>
    %cst_35 = arith.constant 0.000000e+00 : f32
    %45 = vector.broadcast %cst_35 : f32 to vector<8x512xf32>
    %46 = arith.maximumf %44, %45 : vector<8x512xf32>
    %c511_i32_36 = arith.constant 511 : i32
    %47 = tpu.dynamic_rotate %46 by %c511_i32_36 dim 1 : vector<8x512xf32>, i32 -> vector<8x512xf32>
    %c510_i32_37 = arith.constant 510 : i32
    %48 = tpu.dynamic_rotate %46 by %c510_i32_37 dim 1 : vector<8x512xf32>, i32 -> vector<8x512xf32>
    %c496_i32_38 = arith.constant 496 : i32
    %49 = tpu.dynamic_rotate %46 by %c496_i32_38 dim 1 : vector<8x512xf32>, i32 -> vector<8x512xf32>
    %c495_i32_39 = arith.constant 495 : i32
    %50 = tpu.dynamic_rotate %46 by %c495_i32_39 dim 1 : vector<8x512xf32>, i32 -> vector<8x512xf32>
    %c494_i32_40 = arith.constant 494 : i32
    %51 = tpu.dynamic_rotate %46 by %c494_i32_40 dim 1 : vector<8x512xf32>, i32 -> vector<8x512xf32>
    %c480_i32_41 = arith.constant 480 : i32
    %52 = tpu.dynamic_rotate %46 by %c480_i32_41 dim 1 : vector<8x512xf32>, i32 -> vector<8x512xf32>
    %c479_i32_42 = arith.constant 479 : i32
    %53 = tpu.dynamic_rotate %46 by %c479_i32_42 dim 1 : vector<8x512xf32>, i32 -> vector<8x512xf32>
    %c478_i32_43 = arith.constant 478 : i32
    %54 = tpu.dynamic_rotate %46 by %c478_i32_43 dim 1 : vector<8x512xf32>, i32 -> vector<8x512xf32>
    %55 = tpu.concatenate %46, %47, %48, %49, %50, %51, %52, %53, %54 in 0 : vector<8x512xf32>, vector<8x512xf32>, vector<8x512xf32>, vector<8x512xf32>, vector<8x512xf32>, vector<8x512xf32>, vector<8x512xf32>, vector<8x512xf32>, vector<8x512xf32> -> vector<72x512xf32>
    %c0_44 = arith.constant 0 : index
    %c2_45 = arith.constant 2 : index
    %c0_46 = arith.constant 0 : index
    %c0_47 = arith.constant 0 : index
    %56 = vector.load %arg3[%c0_44, %c2_45, %c0_46, %c0_47] : memref<2x4x8x72xf32, #tpu.memory_space<vmem>>, vector<1x1x8x72xf32>
    %57 = vector.shape_cast %56 : vector<1x1x8x72xf32> to vector<8x72xf32>
    %cst_48 = arith.constant dense<0.000000e+00> : vector<8x512xf32>
    %58 = tpu.matmul %57, %55, %cst_48 {dimension_numbers = #tpu.dot_dimension_numbers<[1], [0], [0], [1], [0, 0, 1, 1], [], []>} : vector<8x72xf32>, vector<72x512xf32>, vector<8x512xf32> -> vector<8x512xf32>
    %c0_49 = arith.constant 0 : index
    %c3 = arith.constant 3 : index
    %c0_50 = arith.constant 0 : index
    %c0_51 = arith.constant 0 : index
    %59 = vector.load %arg4[%c0_49, %c3, %c0_50, %c0_51] : memref<2x5x8x1xf32, #tpu.memory_space<vmem>>, vector<1x1x8x1xf32>
    %60 = vector.shape_cast %59 : vector<1x1x8x1xf32> to vector<8x1xf32>
    %61 = vector.broadcast %60 : vector<8x1xf32> to vector<8x512xf32>
    %62 = arith.addf %58, %61 : vector<8x512xf32>
    %cst_52 = arith.constant 0.000000e+00 : f32
    %63 = vector.broadcast %cst_52 : f32 to vector<8x512xf32>
    %64 = arith.maximumf %62, %63 : vector<8x512xf32>
    %c511_i32_53 = arith.constant 511 : i32
    %65 = tpu.dynamic_rotate %64 by %c511_i32_53 dim 1 : vector<8x512xf32>, i32 -> vector<8x512xf32>
    %c510_i32_54 = arith.constant 510 : i32
    %66 = tpu.dynamic_rotate %64 by %c510_i32_54 dim 1 : vector<8x512xf32>, i32 -> vector<8x512xf32>
    %c496_i32_55 = arith.constant 496 : i32
    %67 = tpu.dynamic_rotate %64 by %c496_i32_55 dim 1 : vector<8x512xf32>, i32 -> vector<8x512xf32>
    %c495_i32_56 = arith.constant 495 : i32
    %68 = tpu.dynamic_rotate %64 by %c495_i32_56 dim 1 : vector<8x512xf32>, i32 -> vector<8x512xf32>
    %c494_i32_57 = arith.constant 494 : i32
    %69 = tpu.dynamic_rotate %64 by %c494_i32_57 dim 1 : vector<8x512xf32>, i32 -> vector<8x512xf32>
    %c480_i32_58 = arith.constant 480 : i32
    %70 = tpu.dynamic_rotate %64 by %c480_i32_58 dim 1 : vector<8x512xf32>, i32 -> vector<8x512xf32>
    %c479_i32_59 = arith.constant 479 : i32
    %71 = tpu.dynamic_rotate %64 by %c479_i32_59 dim 1 : vector<8x512xf32>, i32 -> vector<8x512xf32>
    %c478_i32_60 = arith.constant 478 : i32
    %72 = tpu.dynamic_rotate %64 by %c478_i32_60 dim 1 : vector<8x512xf32>, i32 -> vector<8x512xf32>
    %73 = tpu.concatenate %64, %65, %66, %67, %68, %69, %70, %71, %72 in 0 : vector<8x512xf32>, vector<8x512xf32>, vector<8x512xf32>, vector<8x512xf32>, vector<8x512xf32>, vector<8x512xf32>, vector<8x512xf32>, vector<8x512xf32>, vector<8x512xf32> -> vector<72x512xf32>
    %c0_61 = arith.constant 0 : index
    %c3_62 = arith.constant 3 : index
    %c0_63 = arith.constant 0 : index
    %c0_64 = arith.constant 0 : index
    %74 = vector.load %arg3[%c0_61, %c3_62, %c0_63, %c0_64] : memref<2x4x8x72xf32, #tpu.memory_space<vmem>>, vector<1x1x8x72xf32>
    %75 = vector.shape_cast %74 : vector<1x1x8x72xf32> to vector<8x72xf32>
    %cst_65 = arith.constant dense<0.000000e+00> : vector<8x512xf32>
    %76 = tpu.matmul %75, %73, %cst_65 {dimension_numbers = #tpu.dot_dimension_numbers<[1], [0], [0], [1], [0, 0, 1, 1], [], []>} : vector<8x72xf32>, vector<72x512xf32>, vector<8x512xf32> -> vector<8x512xf32>
    %c0_66 = arith.constant 0 : index
    %c4 = arith.constant 4 : index
    %c0_67 = arith.constant 0 : index
    %c0_68 = arith.constant 0 : index
    %77 = vector.load %arg4[%c0_66, %c4, %c0_67, %c0_68] : memref<2x5x8x1xf32, #tpu.memory_space<vmem>>, vector<1x1x8x1xf32>
    %78 = vector.shape_cast %77 : vector<1x1x8x1xf32> to vector<8x1xf32>
    %79 = vector.broadcast %78 : vector<8x1xf32> to vector<8x512xf32>
    %80 = arith.addf %76, %79 : vector<8x512xf32>
    %cst_69 = arith.constant 0.000000e+00 : f32
    %81 = vector.broadcast %cst_69 : f32 to vector<8x512xf32>
    %82 = arith.maximumf %80, %81 : vector<8x512xf32>
    %c0_70 = arith.constant 0 : index
    %c0_71 = arith.constant 0 : index
    %c0_72 = arith.constant 0 : index
    %83 = vector.load %arg5[%c0_70, %c0_71, %c0_72] : memref<2x8x512xf32, #tpu.memory_space<vmem>>, vector<1x8x512xf32>
    %84 = vector.shape_cast %83 : vector<1x8x512xf32> to vector<8x512xf32>
    %85 = vector.shape_cast %82 : vector<8x512xf32> to vector<1x8x512xf32>
    tpu.vector_store %arg5[%c0_70, %c0_71, %c0_72], %85 {strides = array<i32>} : memref<2x8x512xf32, #tpu.memory_space<vmem>>, vector<1x8x512xf32>,
    %c1_73 = arith.constant 1 : index
    %c0_74 = arith.constant 0 : index
    %c0_75 = arith.constant 0 : index
    %86 = vector.load %arg2[%c1_73, %c0_74, %c0_75] : memref<2x8x9xf32, #tpu.memory_space<vmem>>, vector<1x8x9xf32>
    %87 = vector.shape_cast %86 : vector<1x8x9xf32> to vector<8x9xf32>
    %c1_76 = arith.constant 1 : index
    %c0_77 = arith.constant 0 : index
    %c0_78 = arith.constant 0 : index
    %88 = vector.load %arg1[%c1_76, %c0_77, %c0_78] : memref<2x9x512xf32, #tpu.memory_space<vmem>>, vector<1x9x512xf32>
    %89 = vector.shape_cast %88 : vector<1x9x512xf32> to vector<9x512xf32>
    %cst_79 = arith.constant dense<0.000000e+00> : vector<8x512xf32>
    %90 = tpu.matmul %87, %89, %cst_79 {dimension_numbers = #tpu.dot_dimension_numbers<[1], [0], [0], [1], [0, 0, 1, 1], [], []>} : vector<8x9xf32>, vector<9x512xf32>, vector<8x512xf32> -> vector<8x512xf32>
    %c1_80 = arith.constant 1 : index
    %c0_81 = arith.constant 0 : index
    %c0_82 = arith.constant 0 : index
    %c0_83 = arith.constant 0 : index
    %91 = vector.load %arg4[%c1_80, %c0_81, %c0_82, %c0_83] : memref<2x5x8x1xf32, #tpu.memory_space<vmem>>, vector<1x1x8x1xf32>
    %92 = vector.shape_cast %91 : vector<1x1x8x1xf32> to vector<8x1xf32>
    %93 = vector.broadcast %92 : vector<8x1xf32> to vector<8x512xf32>
    %94 = arith.addf %90, %93 : vector<8x512xf32>
    %cst_84 = arith.constant 0.000000e+00 : f32
    %95 = vector.broadcast %cst_84 : f32 to vector<8x512xf32>
    %96 = arith.maximumf %94, %95 : vector<8x512xf32>
    %c511_i32_85 = arith.constant 511 : i32
    %97 = tpu.dynamic_rotate %96 by %c511_i32_85 dim 1 : vector<8x512xf32>, i32 -> vector<8x512xf32>
    %c510_i32_86 = arith.constant 510 : i32
    %98 = tpu.dynamic_rotate %96 by %c510_i32_86 dim 1 : vector<8x512xf32>, i32 -> vector<8x512xf32>
    %c496_i32_87 = arith.constant 496 : i32
    %99 = tpu.dynamic_rotate %96 by %c496_i32_87 dim 1 : vector<8x512xf32>, i32 -> vector<8x512xf32>
    %c495_i32_88 = arith.constant 495 : i32
    %100 = tpu.dynamic_rotate %96 by %c495_i32_88 dim 1 : vector<8x512xf32>, i32 -> vector<8x512xf32>
    %c494_i32_89 = arith.constant 494 : i32
    %101 = tpu.dynamic_rotate %96 by %c494_i32_89 dim 1 : vector<8x512xf32>, i32 -> vector<8x512xf32>
    %c480_i32_90 = arith.constant 480 : i32
    %102 = tpu.dynamic_rotate %96 by %c480_i32_90 dim 1 : vector<8x512xf32>, i32 -> vector<8x512xf32>
    %c479_i32_91 = arith.constant 479 : i32
    %103 = tpu.dynamic_rotate %96 by %c479_i32_91 dim 1 : vector<8x512xf32>, i32 -> vector<8x512xf32>
    %c478_i32_92 = arith.constant 478 : i32
    %104 = tpu.dynamic_rotate %96 by %c478_i32_92 dim 1 : vector<8x512xf32>, i32 -> vector<8x512xf32>
    %105 = tpu.concatenate %96, %97, %98, %99, %100, %101, %102, %103, %104 in 0 : vector<8x512xf32>, vector<8x512xf32>, vector<8x512xf32>, vector<8x512xf32>, vector<8x512xf32>, vector<8x512xf32>, vector<8x512xf32>, vector<8x512xf32>, vector<8x512xf32> -> vector<72x512xf32>
    %c1_93 = arith.constant 1 : index
    %c0_94 = arith.constant 0 : index
    %c0_95 = arith.constant 0 : index
    %c0_96 = arith.constant 0 : index
    %106 = vector.load %arg3[%c1_93, %c0_94, %c0_95, %c0_96] : memref<2x4x8x72xf32, #tpu.memory_space<vmem>>, vector<1x1x8x72xf32>
    %107 = vector.shape_cast %106 : vector<1x1x8x72xf32> to vector<8x72xf32>
    %cst_97 = arith.constant dense<0.000000e+00> : vector<8x512xf32>
    %108 = tpu.matmul %107, %105, %cst_97 {dimension_numbers = #tpu.dot_dimension_numbers<[1], [0], [0], [1], [0, 0, 1, 1], [], []>} : vector<8x72xf32>, vector<72x512xf32>, vector<8x512xf32> -> vector<8x512xf32>
    %c1_98 = arith.constant 1 : index
    %c1_99 = arith.constant 1 : index
    %c0_100 = arith.constant 0 : index
    %c0_101 = arith.constant 0 : index
    %109 = vector.load %arg4[%c1_98, %c1_99, %c0_100, %c0_101] : memref<2x5x8x1xf32, #tpu.memory_space<vmem>>, vector<1x1x8x1xf32>
    %110 = vector.shape_cast %109 : vector<1x1x8x1xf32> to vector<8x1xf32>
    %111 = vector.broadcast %110 : vector<8x1xf32> to vector<8x512xf32>
    %112 = arith.addf %108, %111 : vector<8x512xf32>
    %cst_102 = arith.constant 0.000000e+00 : f32
    %113 = vector.broadcast %cst_102 : f32 to vector<8x512xf32>
    %114 = arith.maximumf %112, %113 : vector<8x512xf32>
    %c511_i32_103 = arith.constant 511 : i32
    %115 = tpu.dynamic_rotate %114 by %c511_i32_103 dim 1 : vector<8x512xf32>, i32 -> vector<8x512xf32>
    %c510_i32_104 = arith.constant 510 : i32
    %116 = tpu.dynamic_rotate %114 by %c510_i32_104 dim 1 : vector<8x512xf32>, i32 -> vector<8x512xf32>
    %c496_i32_105 = arith.constant 496 : i32
    %117 = tpu.dynamic_rotate %114 by %c496_i32_105 dim 1 : vector<8x512xf32>, i32 -> vector<8x512xf32>
    %c495_i32_106 = arith.constant 495 : i32
    %118 = tpu.dynamic_rotate %114 by %c495_i32_106 dim 1 : vector<8x512xf32>, i32 -> vector<8x512xf32>
    %c494_i32_107 = arith.constant 494 : i32
    %119 = tpu.dynamic_rotate %114 by %c494_i32_107 dim 1 : vector<8x512xf32>, i32 -> vector<8x512xf32>
    %c480_i32_108 = arith.constant 480 : i32
    %120 = tpu.dynamic_rotate %114 by %c480_i32_108 dim 1 : vector<8x512xf32>, i32 -> vector<8x512xf32>
    %c479_i32_109 = arith.constant 479 : i32
    %121 = tpu.dynamic_rotate %114 by %c479_i32_109 dim 1 : vector<8x512xf32>, i32 -> vector<8x512xf32>
    %c478_i32_110 = arith.constant 478 : i32
    %122 = tpu.dynamic_rotate %114 by %c478_i32_110 dim 1 : vector<8x512xf32>, i32 -> vector<8x512xf32>
    %123 = tpu.concatenate %114, %115, %116, %117, %118, %119, %120, %121, %122 in 0 : vector<8x512xf32>, vector<8x512xf32>, vector<8x512xf32>, vector<8x512xf32>, vector<8x512xf32>, vector<8x512xf32>, vector<8x512xf32>, vector<8x512xf32>, vector<8x512xf32> -> vector<72x512xf32>
    %c1_111 = arith.constant 1 : index
    %c1_112 = arith.constant 1 : index
    %c0_113 = arith.constant 0 : index
    %c0_114 = arith.constant 0 : index
    %124 = vector.load %arg3[%c1_111, %c1_112, %c0_113, %c0_114] : memref<2x4x8x72xf32, #tpu.memory_space<vmem>>, vector<1x1x8x72xf32>
    %125 = vector.shape_cast %124 : vector<1x1x8x72xf32> to vector<8x72xf32>
    %cst_115 = arith.constant dense<0.000000e+00> : vector<8x512xf32>
    %126 = tpu.matmul %125, %123, %cst_115 {dimension_numbers = #tpu.dot_dimension_numbers<[1], [0], [0], [1], [0, 0, 1, 1], [], []>} : vector<8x72xf32>, vector<72x512xf32>, vector<8x512xf32> -> vector<8x512xf32>
    %c1_116 = arith.constant 1 : index
    %c2_117 = arith.constant 2 : index
    %c0_118 = arith.constant 0 : index
    %c0_119 = arith.constant 0 : index
    %127 = vector.load %arg4[%c1_116, %c2_117, %c0_118, %c0_119] : memref<2x5x8x1xf32, #tpu.memory_space<vmem>>, vector<1x1x8x1xf32>
    %128 = vector.shape_cast %127 : vector<1x1x8x1xf32> to vector<8x1xf32>
    %129 = vector.broadcast %128 : vector<8x1xf32> to vector<8x512xf32>
    %130 = arith.addf %126, %129 : vector<8x512xf32>
    %cst_120 = arith.constant 0.000000e+00 : f32
    %131 = vector.broadcast %cst_120 : f32 to vector<8x512xf32>
    %132 = arith.maximumf %130, %131 : vector<8x512xf32>
    %c511_i32_121 = arith.constant 511 : i32
    %133 = tpu.dynamic_rotate %132 by %c511_i32_121 dim 1 : vector<8x512xf32>, i32 -> vector<8x512xf32>
    %c510_i32_122 = arith.constant 510 : i32
    %134 = tpu.dynamic_rotate %132 by %c510_i32_122 dim 1 : vector<8x512xf32>, i32 -> vector<8x512xf32>
    %c496_i32_123 = arith.constant 496 : i32
    %135 = tpu.dynamic_rotate %132 by %c496_i32_123 dim 1 : vector<8x512xf32>, i32 -> vector<8x512xf32>
    %c495_i32_124 = arith.constant 495 : i32
    %136 = tpu.dynamic_rotate %132 by %c495_i32_124 dim 1 : vector<8x512xf32>, i32 -> vector<8x512xf32>
    %c494_i32_125 = arith.constant 494 : i32
    %137 = tpu.dynamic_rotate %132 by %c494_i32_125 dim 1 : vector<8x512xf32>, i32 -> vector<8x512xf32>
    %c480_i32_126 = arith.constant 480 : i32
    %138 = tpu.dynamic_rotate %132 by %c480_i32_126 dim 1 : vector<8x512xf32>, i32 -> vector<8x512xf32>
    %c479_i32_127 = arith.constant 479 : i32
    %139 = tpu.dynamic_rotate %132 by %c479_i32_127 dim 1 : vector<8x512xf32>, i32 -> vector<8x512xf32>
    %c478_i32_128 = arith.constant 478 : i32
    %140 = tpu.dynamic_rotate %132 by %c478_i32_128 dim 1 : vector<8x512xf32>, i32 -> vector<8x512xf32>
    %141 = tpu.concatenate %132, %133, %134, %135, %136, %137, %138, %139, %140 in 0 : vector<8x512xf32>, vector<8x512xf32>, vector<8x512xf32>, vector<8x512xf32>, vector<8x512xf32>, vector<8x512xf32>, vector<8x512xf32>, vector<8x512xf32>, vector<8x512xf32> -> vector<72x512xf32>
    %c1_129 = arith.constant 1 : index
    %c2_130 = arith.constant 2 : index
    %c0_131 = arith.constant 0 : index
    %c0_132 = arith.constant 0 : index
    %142 = vector.load %arg3[%c1_129, %c2_130, %c0_131, %c0_132] : memref<2x4x8x72xf32, #tpu.memory_space<vmem>>, vector<1x1x8x72xf32>
    %143 = vector.shape_cast %142 : vector<1x1x8x72xf32> to vector<8x72xf32>
    %cst_133 = arith.constant dense<0.000000e+00> : vector<8x512xf32>
    %144 = tpu.matmul %143, %141, %cst_133 {dimension_numbers = #tpu.dot_dimension_numbers<[1], [0], [0], [1], [0, 0, 1, 1], [], []>} : vector<8x72xf32>, vector<72x512xf32>, vector<8x512xf32> -> vector<8x512xf32>
    %c1_134 = arith.constant 1 : index
    %c3_135 = arith.constant 3 : index
    %c0_136 = arith.constant 0 : index
    %c0_137 = arith.constant 0 : index
    %145 = vector.load %arg4[%c1_134, %c3_135, %c0_136, %c0_137] : memref<2x5x8x1xf32, #tpu.memory_space<vmem>>, vector<1x1x8x1xf32>
    %146 = vector.shape_cast %145 : vector<1x1x8x1xf32> to vector<8x1xf32>
    %147 = vector.broadcast %146 : vector<8x1xf32> to vector<8x512xf32>
    %148 = arith.addf %144, %147 : vector<8x512xf32>
    %cst_138 = arith.constant 0.000000e+00 : f32
    %149 = vector.broadcast %cst_138 : f32 to vector<8x512xf32>
    %150 = arith.maximumf %148, %149 : vector<8x512xf32>
    %c511_i32_139 = arith.constant 511 : i32
    %151 = tpu.dynamic_rotate %150 by %c511_i32_139 dim 1 : vector<8x512xf32>, i32 -> vector<8x512xf32>
    %c510_i32_140 = arith.constant 510 : i32
    %152 = tpu.dynamic_rotate %150 by %c510_i32_140 dim 1 : vector<8x512xf32>, i32 -> vector<8x512xf32>
    %c496_i32_141 = arith.constant 496 : i32
    %153 = tpu.dynamic_rotate %150 by %c496_i32_141 dim 1 : vector<8x512xf32>, i32 -> vector<8x512xf32>
    %c495_i32_142 = arith.constant 495 : i32
    %154 = tpu.dynamic_rotate %150 by %c495_i32_142 dim 1 : vector<8x512xf32>, i32 -> vector<8x512xf32>
    %c494_i32_143 = arith.constant 494 : i32
    %155 = tpu.dynamic_rotate %150 by %c494_i32_143 dim 1 : vector<8x512xf32>, i32 -> vector<8x512xf32>
    %c480_i32_144 = arith.constant 480 : i32
    %156 = tpu.dynamic_rotate %150 by %c480_i32_144 dim 1 : vector<8x512xf32>, i32 -> vector<8x512xf32>
    %c479_i32_145 = arith.constant 479 : i32
    %157 = tpu.dynamic_rotate %150 by %c479_i32_145 dim 1 : vector<8x512xf32>, i32 -> vector<8x512xf32>
    %c478_i32_146 = arith.constant 478 : i32
    %158 = tpu.dynamic_rotate %150 by %c478_i32_146 dim 1 : vector<8x512xf32>, i32 -> vector<8x512xf32>
    %159 = tpu.concatenate %150, %151, %152, %153, %154, %155, %156, %157, %158 in 0 : vector<8x512xf32>, vector<8x512xf32>, vector<8x512xf32>, vector<8x512xf32>, vector<8x512xf32>, vector<8x512xf32>, vector<8x512xf32>, vector<8x512xf32>, vector<8x512xf32> -> vector<72x512xf32>
    %c1_147 = arith.constant 1 : index
    %c3_148 = arith.constant 3 : index
    %c0_149 = arith.constant 0 : index
    %c0_150 = arith.constant 0 : index
    %160 = vector.load %arg3[%c1_147, %c3_148, %c0_149, %c0_150] : memref<2x4x8x72xf32, #tpu.memory_space<vmem>>, vector<1x1x8x72xf32>
    %161 = vector.shape_cast %160 : vector<1x1x8x72xf32> to vector<8x72xf32>
    %cst_151 = arith.constant dense<0.000000e+00> : vector<8x512xf32>
    %162 = tpu.matmul %161, %159, %cst_151 {dimension_numbers = #tpu.dot_dimension_numbers<[1], [0], [0], [1], [0, 0, 1, 1], [], []>} : vector<8x72xf32>, vector<72x512xf32>, vector<8x512xf32> -> vector<8x512xf32>
    %c1_152 = arith.constant 1 : index
    %c4_153 = arith.constant 4 : index
    %c0_154 = arith.constant 0 : index
    %c0_155 = arith.constant 0 : index
    %163 = vector.load %arg4[%c1_152, %c4_153, %c0_154, %c0_155] : memref<2x5x8x1xf32, #tpu.memory_space<vmem>>, vector<1x1x8x1xf32>
    %164 = vector.shape_cast %163 : vector<1x1x8x1xf32> to vector<8x1xf32>
    %165 = vector.broadcast %164 : vector<8x1xf32> to vector<8x512xf32>
    %166 = arith.addf %162, %165 : vector<8x512xf32>
    %cst_156 = arith.constant 0.000000e+00 : f32
    %167 = vector.broadcast %cst_156 : f32 to vector<8x512xf32>
    %168 = arith.maximumf %166, %167 : vector<8x512xf32>
    %c1_157 = arith.constant 1 : index
    %c0_158 = arith.constant 0 : index
    %c0_159 = arith.constant 0 : index
    %169 = vector.load %arg5[%c1_157, %c0_158, %c0_159] : memref<2x8x512xf32, #tpu.memory_space<vmem>>, vector<1x8x512xf32>
    %170 = vector.shape_cast %169 : vector<1x8x512xf32> to vector<8x512xf32>
    %171 = vector.shape_cast %168 : vector<8x512xf32> to vector<1x8x512xf32>
    tpu.vector_store %arg5[%c1_157, %c0_158, %c0_159], %171 {strides = array<i32>} : memref<2x8x512xf32, #tpu.memory_space<vmem>>, vector<1x8x512xf32>,
    return
  }
  func.func @transform_0(%arg0: i32) -> (i32, i32, i32) {
    %c0_i32 = arith.constant 0 : i32
    %c0_i32_0 = arith.constant 0 : i32
    %c0_i32_1 = arith.constant 0 : i32
    return %arg0, %c0_i32, %c0_i32_0 : i32, i32, i32
  }
  func.func @transform_1(%arg0: i32) -> (i32, i32, i32) {
    %c0_i32 = arith.constant 0 : i32
    %c0_i32_0 = arith.constant 0 : i32
    %c0_i32_1 = arith.constant 0 : i32
    return %arg0, %c0_i32, %c0_i32_0 : i32, i32, i32
  }
  func.func @transform_2(%arg0: i32) -> (i32, i32, i32, i32) {
    %c0_i32 = arith.constant 0 : i32
    %c0_i32_0 = arith.constant 0 : i32
    %c0_i32_1 = arith.constant 0 : i32
    %c0_i32_2 = arith.constant 0 : i32
    return %arg0, %c0_i32, %c0_i32_0, %c0_i32_1 : i32, i32, i32, i32
  }
  func.func @transform_3(%arg0: i32) -> (i32, i32, i32, i32) {
    %c0_i32 = arith.constant 0 : i32
    %c0_i32_0 = arith.constant 0 : i32
    %c0_i32_1 = arith.constant 0 : i32
    %c0_i32_2 = arith.constant 0 : i32
    return %arg0, %c0_i32, %c0_i32_0, %c0_i32_1 : i32, i32, i32, i32
  }
  func.func @transform_4(%arg0: i32) -> (i32, i32, i32) {
    %c0_i32 = arith.constant 0 : i32
    %c0_i32_0 = arith.constant 0 : i32
    %c0_i32_1 = arith.constant 0 : i32
    return %arg0, %c0_i32, %c0_i32_0 : i32, i32, i32
  }
}

</mosaic_0001>

<bundles_post_ra>
// kernel: squeeze.3
= control target key start
LH: loop header
LB: loop body
LE: loop exit
PB: predicated region body
PF: predicated region fallthrough
CT: control target
= control target key end

     0   :  { %vm79_vm0 = vcmask 1047556   ;;  %s579_s14 = smov 112   ;;  %s580_s10 = smov 96   ;;  %vm3_vm1 = vcmask 130048   ;;  %s1160_s0 = inlined_call_operand.vmem [shape: f32[1,8,512], index: 0, kind: input, shape index: {}]   ;;  %s1161_s1 = inlined_call_operand.vmem [shape: f32[8,2,16,16], index: 1, kind: output, shape index: {}]  }
   0x1   :  { %v474_v0 = vld [vmem:[%s1160_s0 + $0x4] ss:$8 sm:$0xf]   ;;  %v475_v1 = vld [vmem:[%s1160_s0 - $0x1b] ss:$8 sm:$0xf0]  }
   0x2   :  { %v106_v2 = vsel %vm79_vm0, %v475_v1, %v474_v0  ;;  %v76_v3 = vld [vmem:[%s1160_s0] ss:$8 sm:$0xf]   ;;  %v467_v4 = vld [vmem:[%s1160_s0 - $0x1f] ss:$8 sm:$0xf0]  }
   0x3   :  { %107 = vrot.lane.b32.xlu1 %v106_v2, %s579_s14  ;;  %v80_v5 = vsel %vm79_vm0, %v467_v4, %v76_v3  ;;  %v478_v6 = vld [vmem:[%s1160_s0 + $0x6] ss:$8 sm:$0xf]   ;;  %v479_v7 = vld [vmem:[%s1160_s0 - $0x19] ss:$8 sm:$0xf0]  }
   0x4   :  { %81 = vrot.lane.b32.xlu0 %v80_v5, %s579_s14  ;;  %v119_v8 = vsel %vm79_vm0, %v479_v7, %v478_v6  ;;  %v470_v9 = vld [vmem:[%s1160_s0 + $0x2] ss:$8 sm:$0xf]   ;;  %v471_v10 = vld [vmem:[%s1160_s0 - $0x1d] ss:$8 sm:$0xf0]  }
   0x5   :  { %v93_v11 = vsel %vm79_vm0, %v471_v10, %v470_v9  ;;  %v485_v12 = vld [vmem:[%s1160_s0 + $0x2] ss:$8 sm:$0xf]   ;;  %v486_v13 = vld [vmem:[%s1160_s0 - $0x1d] ss:$8 sm:$0xf0]  }
   0x6   :  { %v127_v14 = vld [vmem:[%s1160_s0] ss:$8 sm:$0xf]   ;;  %v482_v15 = vld [vmem:[%s1160_s0 - $0x1f] ss:$8 sm:$0xf0]   ;;  %v144_v16 = vsel %vm79_vm0, %v486_v13, %v485_v12 }
   0x7   :  { %120 = vrot.lane.b32.xlu1 %v119_v8, %s579_s14  ;;  %v131_v17 = vsel %vm79_vm0, %v482_v15, %v127_v14  ;;  %v493_v18 = vld [vmem:[%s1160_s0 + $0x6] ss:$8 sm:$0xf]   ;;  %v494_v19 = vld [vmem:[%s1160_s0 - $0x19] ss:$8 sm:$0xf0]  }
   0x8   :  { %94 = vrot.lane.b32.xlu0 %v93_v11, %s579_s14  ;;  %v489_v20 = vld [vmem:[%s1160_s0 + $0x4] ss:$8 sm:$0xf]   ;;  %v490_v21 = vld [vmem:[%s1160_s0 - $0x1b] ss:$8 sm:$0xf0]   ;;  %v170_v22 = vsel %vm79_vm0, %v494_v19, %v493_v18 }
   0x9   :  { %v157_v23 = vsel %vm79_vm0, %v490_v21, %v489_v20  ;;  %v500_v24 = vld [vmem:[%s1160_s0 + $0x2] ss:$8 sm:$0xf]   ;;  %v501_v25 = vld [vmem:[%s1160_s0 - $0x1d] ss:$8 sm:$0xf0]  }
   0xa   :  { %v178_v26 = vld [vmem:[%s1160_s0] ss:$8 sm:$0xf]   ;;  %v497_v27 = vld [vmem:[%s1160_s0 - $0x1f] ss:$8 sm:$0xf0]   ;;  %v195_v28 = vsel %vm79_vm0, %v501_v25, %v500_v24 }
   0xb   :  { %145 = vrot.lane.b32.xlu1 %v144_v16, %s580_s10  ;;  %v182_v29 = vsel %vm79_vm0, %v497_v27, %v178_v26  ;;  %v508_v30 = vld [vmem:[%s1160_s0 + $0x6] ss:$8 sm:$0xf]   ;;  %v509_v31 = vld [vmem:[%s1160_s0 - $0x19] ss:$8 sm:$0xf0]  }
   0xc   :  { %132 = vrot.lane.b32.xlu0 %v131_v17, %s580_s10  ;;  %v504_v32 = vld [vmem:[%s1160_s0 + $0x4] ss:$8 sm:$0xf]   ;;  %v505_v33 = vld [vmem:[%s1160_s0 - $0x1b] ss:$8 sm:$0xf0]   ;;  %v221_v34 = vsel %vm79_vm0, %v509_v31, %v508_v30 }
   0xd   :  { %s581_s27 = smov 80   ;;  %v208_v35 = vsel %vm79_vm0, %v505_v33, %v504_v32  ;;  %v515_v36 = vld [vmem:[%s1160_s0 + $0x2] ss:$8 sm:$0xf]   ;;  %s582_s15 = smov 64  }
   0xe   :  { %v516_v37 = vld [vmem:[%s1160_s0 - $0x1d] ss:$8 sm:$0xf0]   ;;  %v229_v38 = vld [vmem:[%s1160_s0] ss:$8 sm:$0xf]  }
   0xf   :  { %171 = vrot.lane.b32.xlu1 %v170_v22, %s580_s10  ;;  %v512_v39 = vld [vmem:[%s1160_s0 - $0x1f] ss:$8 sm:$0xf0]   ;;  %v246_v40 = vsel %vm79_vm0, %v516_v37, %v515_v36  ;;  %v523_v42 = vld [vmem:[%s1160_s0 + $0x6] ss:$8 sm:$0xf]  }
  0x10   :  { %158 = vrot.lane.b32.xlu0 %v157_v23, %s580_s10  ;;  %v233_v41 = vsel %vm79_vm0, %v512_v39, %v229_v38  ;;  %v524_v43 = vld [vmem:[%s1160_s0 - $0x19] ss:$8 sm:$0xf0]   ;;  %v519_v44 = vld [vmem:[%s1160_s0 + $0x4] ss:$8 sm:$0xf]  }
  0x11   :  { %v520_v45 = vld [vmem:[%s1160_s0 - $0x1b] ss:$8 sm:$0xf0]   ;;  %v272_v46 = vsel %vm79_vm0, %v524_v43, %v523_v42  ;;  %v530_v48 = vld [vmem:[%s1160_s0 + $0x2] ss:$8 sm:$0xf]  }
  0x12   :  { %v259_v47 = vsel %vm79_vm0, %v520_v45, %v519_v44  ;;  %v531_v49 = vld [vmem:[%s1160_s0 - $0x1d] ss:$8 sm:$0xf0]   ;;  %v280_v50 = vld [vmem:[%s1160_s0] ss:$8 sm:$0xf]  }
  0x13   :  { %196 = vrot.lane.b32.xlu1 %v195_v28, %s581_s27  ;;  %v527_v51 = vld [vmem:[%s1160_s0 - $0x1f] ss:$8 sm:$0xf0]   ;;  %v297_v52 = vsel %vm79_vm0, %v531_v49, %v530_v48  ;;  %v538_v54 = vld [vmem:[%s1160_s0 + $0x6] ss:$8 sm:$0xf]  }
  0x14   :  { %183 = vrot.lane.b32.xlu0 %v182_v29, %s581_s27  ;;  %v284_v53 = vsel %vm79_vm0, %v527_v51, %v280_v50  ;;  %v539_v55 = vld [vmem:[%s1160_s0 - $0x19] ss:$8 sm:$0xf0]   ;;  %v534_v56 = vld [vmem:[%s1160_s0 + $0x4] ss:$8 sm:$0xf]  }
  0x15   :  { %v535_v57 = vld [vmem:[%s1160_s0 - $0x1b] ss:$8 sm:$0xf0]   ;;  %s583_s3 = smov 48   ;;  %v323_v58 = vsel %vm79_vm0, %v539_v55, %v538_v54  ;;  %s584_s26 = smov 32  }
  0x16   :  { %v310_v59 = vsel %vm79_vm0, %v535_v57, %v534_v56  ;;  %v545_v60 = vld [vmem:[%s1160_s0 + $0x2] ss:$8 sm:$0xf]   ;;  %v546_v61 = vld [vmem:[%s1160_s0 - $0x1d] ss:$8 sm:$0xf0]  }
  0x17   :  { %222 = vrot.lane.b32.xlu1 %v221_v34, %s581_s27  ;;  %v331_v62 = vld [vmem:[%s1160_s0] ss:$8 sm:$0xf]   ;;  %v542_v63 = vld [vmem:[%s1160_s0 - $0x1f] ss:$8 sm:$0xf0]   ;;  %v348_v0 = vsel %vm79_vm0, %v546_v61, %v545_v60 }
  0x18   :  { %209 = vrot.lane.b32.xlu0 %v208_v35, %s581_s27  ;;  %v553_v1 = vld [vmem:[%s1160_s0 + $0x6] ss:$8 sm:$0xf]   ;;  %v554_v2 = vld [vmem:[%s1160_s0 - $0x19] ss:$8 sm:$0xf0]   ;;  %v335_v3 = vsel %vm79_vm0, %v542_v63, %v331_v62 }
  0x19   :  { %v549_v4 = vld [vmem:[%s1160_s0 + $0x4] ss:$8 sm:$0xf]   ;;  %v550_v5 = vld [vmem:[%s1160_s0 - $0x1b] ss:$8 sm:$0xf0]   ;;  %v374_v10 = vsel %vm79_vm0, %v554_v2, %v553_v1 }
  0x1a   :  { %v2_v6 = vld [vmem:[%s1160_s0] sm:$0xff]   ;;  %v440_v7 = vld [vmem:[%s1160_s0 + $0x8] sm:$0xff]   ;;  %v449_v8 = vld [vmem:[%s1160_s0 + $0x10] sm:$0xff]   ;;  %v361_v11 = vsel %vm79_vm0, %v550_v5, %v549_v4 }
  0x1b   :  { %247 = vrot.lane.b32.xlu1 %v246_v40, %s582_s15  ;;  %4 = vst.msk [vmem:[%s1161_s1] sm:$0x1] %vm3_vm1, %v2_v6   ;;  %433 = vst.msk [vmem:[%s1161_s1 + $0x1f] sm:$0x2] %vm3_vm1, %v2_v6   ;;  %v458_v9 = vld [vmem:[%s1160_s0 + $0x18] sm:$0xff]  }
  0x1c   :  { %234 = vrot.lane.b32.xlu0 %v233_v41, %s582_s15  ;;  %434 = vst.msk [vmem:[%s1161_s1 + $0x3e] sm:$0x4] %vm3_vm1, %v2_v6   ;;  %435 = vst.msk [vmem:[%s1161_s1 + $0x5d] sm:$0x8] %vm3_vm1, %v2_v6  }
  0x1d   :  { %436 = vst.msk [vmem:[%s1161_s1 + $0x7c] sm:$0x10] %vm3_vm1, %v2_v6   ;;  %437 = vst.msk [vmem:[%s1161_s1 + $0x9b] sm:$0x20] %vm3_vm1, %v2_v6  }
  0x1e   :  { %438 = vst.msk [vmem:[%s1161_s1 + $0xba] sm:$0x40] %vm3_vm1, %v2_v6   ;;  %439 = vst.msk [vmem:[%s1161_s1 + $0xd9] sm:$0x80] %vm3_vm1, %v2_v6  }
  0x1f   :  { %273 = vrot.lane.b32.xlu1 %v272_v46, %s582_s15  ;;  %441 = vst.msk [vmem:[%s1161_s1 + $0x8] sm:$0x1] %vm3_vm1, %v440_v7   ;;  %442 = vst.msk [vmem:[%s1161_s1 + $0x27] sm:$0x2] %vm3_vm1, %v440_v7  }
  0x20   :  { %260 = vrot.lane.b32.xlu0 %v259_v47, %s582_s15  ;;  %443 = vst.msk [vmem:[%s1161_s1 + $0x46] sm:$0x4] %vm3_vm1, %v440_v7   ;;  %444 = vst.msk [vmem:[%s1161_s1 + $0x65] sm:$0x8] %vm3_vm1, %v440_v7  }
  0x21   :  { %445 = vst.msk [vmem:[%s1161_s1 + $0x84] sm:$0x10] %vm3_vm1, %v440_v7   ;;  %446 = vst.msk [vmem:[%s1161_s1 + $0xa3] sm:$0x20] %vm3_vm1, %v440_v7  }
  0x22   :  { %447 = vst.msk [vmem:[%s1161_s1 + $0xc2] sm:$0x40] %vm3_vm1, %v440_v7   ;;  %448 = vst.msk [vmem:[%s1161_s1 + $0xe1] sm:$0x80] %vm3_vm1, %v440_v7  }
  0x23   :  { %298 = vrot.lane.b32.xlu1 %v297_v52, %s583_s3  ;;  %450 = vst.msk [vmem:[%s1161_s1 + $0x10] sm:$0x1] %vm3_vm1, %v449_v8   ;;  %451 = vst.msk [vmem:[%s1161_s1 + $0x2f] sm:$0x2] %vm3_vm1, %v449_v8  }
  0x24   :  { %285 = vrot.lane.b32.xlu0 %v284_v53, %s583_s3  ;;  %452 = vst.msk [vmem:[%s1161_s1 + $0x4e] sm:$0x4] %vm3_vm1, %v449_v8   ;;  %453 = vst.msk [vmem:[%s1161_s1 + $0x6d] sm:$0x8] %vm3_vm1, %v449_v8  }
  0x25   :  { %454 = vst.msk [vmem:[%s1161_s1 + $0x8c] sm:$0x10] %vm3_vm1, %v449_v8   ;;  %455 = vst.msk [vmem:[%s1161_s1 + $0xab] sm:$0x20] %vm3_vm1, %v449_v8  }
  0x26   :  { %456 = vst.msk [vmem:[%s1161_s1 + $0xca] sm:$0x40] %vm3_vm1, %v449_v8   ;;  %457 = vst.msk [vmem:[%s1161_s1 + $0xe9] sm:$0x80] %vm3_vm1, %v449_v8  }
  0x27   :  { %324 = vrot.lane.b32.xlu1 %v323_v58, %s583_s3  ;;  %459 = vst.msk [vmem:[%s1161_s1 + $0x18] sm:$0x1] %vm3_vm1, %v458_v9   ;;  %460 = vst.msk [vmem:[%s1161_s1 + $0x37] sm:$0x2] %vm3_vm1, %v458_v9  }
  0x28   :  { %311 = vrot.lane.b32.xlu0 %v310_v59, %s583_s3  ;;  %461 = vst.msk [vmem:[%s1161_s1 + $0x56] sm:$0x4] %vm3_vm1, %v458_v9   ;;  %462 = vst.msk [vmem:[%s1161_s1 + $0x75] sm:$0x8] %vm3_vm1, %v458_v9  }
  0x29   :  { %463 = vst.msk [vmem:[%s1161_s1 + $0x94] sm:$0x10] %vm3_vm1, %v458_v9   ;;  %464 = vst.msk [vmem:[%s1161_s1 + $0xb3] sm:$0x20] %vm3_vm1, %v458_v9  }
  0x2a   :  { %465 = vst.msk [vmem:[%s1161_s1 + $0xd2] sm:$0x40] %vm3_vm1, %v458_v9   ;;  %466 = vst.msk [vmem:[%s1161_s1 + $0xf1] sm:$0x80] %vm3_vm1, %v458_v9  }
  0x2b   :  { %349 = vrot.lane.b32.xlu1 %v348_v0, %s584_s26  ;;  %v560_v12 = vld [vmem:[%s1160_s0 + $0x2] ss:$8 sm:$0xf]   ;;  %v561_v13 = vld [vmem:[%s1160_s0 - $0x1d] ss:$8 sm:$0xf0]  }
  0x2c   :  { %336 = vrot.lane.b32.xlu0 %v335_v3, %s584_s26  ;;  %v382_v14 = vld [vmem:[%s1160_s0] ss:$8 sm:$0xf]   ;;  %v557_v15 = vld [vmem:[%s1160_s0 - $0x1f] ss:$8 sm:$0xf0]   ;;  %v399_v16 = vsel %vm79_vm0, %v561_v13, %v560_v12 }
  0x2d   :  { %v386_v17 = vsel %vm79_vm0, %v557_v15, %v382_v14  ;;  %v568_v18 = vld [vmem:[%s1160_s0 + $0x6] ss:$8 sm:$0xf]   ;;  %v569_v19 = vld [vmem:[%s1160_s0 - $0x19] ss:$8 sm:$0xf0]  }
  0x2e   :  { %v564_v20 = vld [vmem:[%s1160_s0 + $0x4] ss:$8 sm:$0xf]   ;;  %v565_v21 = vld [vmem:[%s1160_s0 - $0x1b] ss:$8 sm:$0xf0]   ;;  %v425_v22 = vsel %vm79_vm0, %v569_v19, %v568_v18 }
  0x2f   :  { %375 = vrot.lane.b32.xlu1 %v374_v10, %s584_s26  ;;  %s585_s0 = smov 16   ;;  %v412_v23 = vsel %vm79_vm0, %v565_v21, %v564_v20 }
  0x30   :  { %362 = vrot.lane.b32.xlu0 %v361_v11, %s584_s26 }
  0x33   :  { %400 = vrot.lane.b32.xlu1 %v399_v16, %s585_s0 }
  0x34   :  { %387 = vrot.lane.b32.xlu0 %v386_v17, %s585_s0 }
  0x37   :  { %426 = vrot.lane.b32.xlu1 %v425_v22, %s585_s0 }
  0x38   :  { %413 = vrot.lane.b32.xlu0 %v412_v23, %s585_s0 }
  0x75   :  { %v108_v24 = vpop.permute.xlu1 %107  }
  0x76   :  { %476 = vst.msk [vmem:[%s1161_s1 + $0x81] ss:$8 sm:$0xf] %vm3_vm1, %v108_v24   ;;  %477 = vst.msk [vmem:[%s1161_s1 + $0x81] ss:$8 sm:$0xf0] %vm3_vm1, %v108_v24   ;;  %v82_v25 = vpop.permute.xlu0 %81  }
  0x77   :  { %468 = vst.msk [vmem:[%s1161_s1 + $0x1] ss:$8 sm:$0xf] %vm3_vm1, %v82_v25   ;;  %469 = vst.msk [vmem:[%s1161_s1 + $0x1] ss:$8 sm:$0xf0] %vm3_vm1, %v82_v25  }
  0x79   :  { %v121_v26 = vpop.permute.xlu1 %120  }
  0x7a   :  { %480 = vst.msk [vmem:[%s1161_s1 + $0xc1] ss:$8 sm:$0xf] %vm3_vm1, %v121_v26   ;;  %481 = vst.msk [vmem:[%s1161_s1 + $0xc1] ss:$8 sm:$0xf0] %vm3_vm1, %v121_v26   ;;  %v95_v27 = vpop.permute.xlu0 %94  }
  0x7b   :  { %472 = vst.msk [vmem:[%s1161_s1 + $0x41] ss:$8 sm:$0xf] %vm3_vm1, %v95_v27   ;;  %473 = vst.msk [vmem:[%s1161_s1 + $0x41] ss:$8 sm:$0xf0] %vm3_vm1, %v95_v27  }
  0x7d   :  { %v146_v28 = vpop.permute.xlu1 %145  }
  0x7e   :  { %487 = vst.msk [vmem:[%s1161_s1 + $0x42] ss:$8 sm:$0xf] %vm3_vm1, %v146_v28   ;;  %488 = vst.msk [vmem:[%s1161_s1 + $0x42] ss:$8 sm:$0xf0] %vm3_vm1, %v146_v28   ;;  %v133_v29 = vpop.permute.xlu0 %132  }
  0x7f   :  { %483 = vst.msk [vmem:[%s1161_s1 + $0x2] ss:$8 sm:$0xf] %vm3_vm1, %v133_v29   ;;  %484 = vst.msk [vmem:[%s1161_s1 + $0x2] ss:$8 sm:$0xf0] %vm3_vm1, %v133_v29  }
  0x81   :  { %v172_v30 = vpop.permute.xlu1 %171  }
  0x82   :  { %495 = vst.msk [vmem:[%s1161_s1 + $0xc2] ss:$8 sm:$0xf] %vm3_vm1, %v172_v30   ;;  %496 = vst.msk [vmem:[%s1161_s1 + $0xc2] ss:$8 sm:$0xf0] %vm3_vm1, %v172_v30   ;;  %v159_v31 = vpop.permute.xlu0 %158  }
  0x83   :  { %491 = vst.msk [vmem:[%s1161_s1 + $0x82] ss:$8 sm:$0xf] %vm3_vm1, %v159_v31   ;;  %492 = vst.msk [vmem:[%s1161_s1 + $0x82] ss:$8 sm:$0xf0] %vm3_vm1, %v159_v31  }
  0x85   :  { %v197_v32 = vpop.permute.xlu1 %196  }
  0x86   :  { %502 = vst.msk [vmem:[%s1161_s1 + $0x43] ss:$8 sm:$0xf] %vm3_vm1, %v197_v32   ;;  %503 = vst.msk [vmem:[%s1161_s1 + $0x43] ss:$8 sm:$0xf0] %vm3_vm1, %v197_v32   ;;  %v184_v33 = vpop.permute.xlu0 %183  }
  0x87   :  { %498 = vst.msk [vmem:[%s1161_s1 + $0x3] ss:$8 sm:$0xf] %vm3_vm1, %v184_v33   ;;  %499 = vst.msk [vmem:[%s1161_s1 + $0x3] ss:$8 sm:$0xf0] %vm3_vm1, %v184_v33  }
  0x89   :  { %v223_v34 = vpop.permute.xlu1 %222  }
  0x8a   :  { %510 = vst.msk [vmem:[%s1161_s1 + $0xc3] ss:$8 sm:$0xf] %vm3_vm1, %v223_v34   ;;  %511 = vst.msk [vmem:[%s1161_s1 + $0xc3] ss:$8 sm:$0xf0] %vm3_vm1, %v223_v34   ;;  %v210_v35 = vpop.permute.xlu0 %209  }
  0x8b   :  { %506 = vst.msk [vmem:[%s1161_s1 + $0x83] ss:$8 sm:$0xf] %vm3_vm1, %v210_v35   ;;  %507 = vst.msk [vmem:[%s1161_s1 + $0x83] ss:$8 sm:$0xf0] %vm3_vm1, %v210_v35  }
  0x8d   :  { %v248_v36 = vpop.permute.xlu1 %247  }
  0x8e   :  { %517 = vst.msk [vmem:[%s1161_s1 + $0x44] ss:$8 sm:$0xf] %vm3_vm1, %v248_v36   ;;  %518 = vst.msk [vmem:[%s1161_s1 + $0x44] ss:$8 sm:$0xf0] %vm3_vm1, %v248_v36   ;;  %v235_v37 = vpop.permute.xlu0 %234  }
  0x8f   :  { %513 = vst.msk [vmem:[%s1161_s1 + $0x4] ss:$8 sm:$0xf] %vm3_vm1, %v235_v37   ;;  %514 = vst.msk [vmem:[%s1161_s1 + $0x4] ss:$8 sm:$0xf0] %vm3_vm1, %v235_v37  }
  0x91   :  { %v274_v38 = vpop.permute.xlu1 %273  }
  0x92   :  { %525 = vst.msk [vmem:[%s1161_s1 + $0xc4] ss:$8 sm:$0xf] %vm3_vm1, %v274_v38   ;;  %526 = vst.msk [vmem:[%s1161_s1 + $0xc4] ss:$8 sm:$0xf0] %vm3_vm1, %v274_v38   ;;  %v261_v39 = vpop.permute.xlu0 %260  }
  0x93   :  { %521 = vst.msk [vmem:[%s1161_s1 + $0x84] ss:$8 sm:$0xf] %vm3_vm1, %v261_v39   ;;  %522 = vst.msk [vmem:[%s1161_s1 + $0x84] ss:$8 sm:$0xf0] %vm3_vm1, %v261_v39  }
  0x95   :  { %v299_v40 = vpop.permute.xlu1 %298  }
  0x96   :  { %532 = vst.msk [vmem:[%s1161_s1 + $0x45] ss:$8 sm:$0xf] %vm3_vm1, %v299_v40   ;;  %533 = vst.msk [vmem:[%s1161_s1 + $0x45] ss:$8 sm:$0xf0] %vm3_vm1, %v299_v40   ;;  %v286_v41 = vpop.permute.xlu0 %285  }
  0x97   :  { %528 = vst.msk [vmem:[%s1161_s1 + $0x5] ss:$8 sm:$0xf] %vm3_vm1, %v286_v41   ;;  %529 = vst.msk [vmem:[%s1161_s1 + $0x5] ss:$8 sm:$0xf0] %vm3_vm1, %v286_v41  }
  0x99   :  { %v325_v42 = vpop.permute.xlu1 %324  }
  0x9a   :  { %540 = vst.msk [vmem:[%s1161_s1 + $0xc5] ss:$8 sm:$0xf] %vm3_vm1, %v325_v42   ;;  %541 = vst.msk [vmem:[%s1161_s1 + $0xc5] ss:$8 sm:$0xf0] %vm3_vm1, %v325_v42   ;;  %v312_v43 = vpop.permute.xlu0 %311  }
  0x9b   :  { %536 = vst.msk [vmem:[%s1161_s1 + $0x85] ss:$8 sm:$0xf] %vm3_vm1, %v312_v43   ;;  %537 = vst.msk [vmem:[%s1161_s1 + $0x85] ss:$8 sm:$0xf0] %vm3_vm1, %v312_v43  }
  0x9d   :  { %v350_v44 = vpop.permute.xlu1 %349  }
  0x9e   :  { %547 = vst.msk [vmem:[%s1161_s1 + $0x46] ss:$8 sm:$0xf] %vm3_vm1, %v350_v44   ;;  %548 = vst.msk [vmem:[%s1161_s1 + $0x46] ss:$8 sm:$0xf0] %vm3_vm1, %v350_v44   ;;  %v337_v45 = vpop.permute.xlu0 %336  }
  0x9f   :  { %543 = vst.msk [vmem:[%s1161_s1 + $0x6] ss:$8 sm:$0xf] %vm3_vm1, %v337_v45   ;;  %544 = vst.msk [vmem:[%s1161_s1 + $0x6] ss:$8 sm:$0xf0] %vm3_vm1, %v337_v45  }
  0xa1   :  { %v376_v46 = vpop.permute.xlu1 %375  }
  0xa2   :  { %555 = vst.msk [vmem:[%s1161_s1 + $0xc6] ss:$8 sm:$0xf] %vm3_vm1, %v376_v46   ;;  %556 = vst.msk [vmem:[%s1161_s1 + $0xc6] ss:$8 sm:$0xf0] %vm3_vm1, %v376_v46   ;;  %v363_v47 = vpop.permute.xlu0 %362  }
  0xa3   :  { %551 = vst.msk [vmem:[%s1161_s1 + $0x86] ss:$8 sm:$0xf] %vm3_vm1, %v363_v47   ;;  %552 = vst.msk [vmem:[%s1161_s1 + $0x86] ss:$8 sm:$0xf0] %vm3_vm1, %v363_v47  }
  0xa5   :  { %v401_v48 = vpop.permute.xlu1 %400  }
  0xa6   :  { %562 = vst.msk [vmem:[%s1161_s1 + $0x47] ss:$8 sm:$0xf] %vm3_vm1, %v401_v48   ;;  %563 = vst.msk [vmem:[%s1161_s1 + $0x47] ss:$8 sm:$0xf0] %vm3_vm1, %v401_v48   ;;  %v388_v49 = vpop.permute.xlu0 %387  }
  0xa7   :  { %558 = vst.msk [vmem:[%s1161_s1 + $0x7] ss:$8 sm:$0xf] %vm3_vm1, %v388_v49   ;;  %559 = vst.msk [vmem:[%s1161_s1 + $0x7] ss:$8 sm:$0xf0] %vm3_vm1, %v388_v49  }
  0xa9   :  { %v427_v50 = vpop.permute.xlu1 %426  }
  0xaa   :  { %570 = vst.msk [vmem:[%s1161_s1 + $0xc7] ss:$8 sm:$0xf] %vm3_vm1, %v427_v50   ;;  %571 = vst.msk [vmem:[%s1161_s1 + $0xc7] ss:$8 sm:$0xf0] %vm3_vm1, %v427_v50   ;;  %v414_v51 = vpop.permute.xlu0 %413  }
  0xab   :  { %566 = vst.msk [vmem:[%s1161_s1 + $0x87] ss:$8 sm:$0xf] %vm3_vm1, %v414_v51   ;;  %567 = vst.msk [vmem:[%s1161_s1 + $0x87] ss:$8 sm:$0xf0] %vm3_vm1, %v414_v51  }

// kernel: _cnn_forward_impl.1
= control target key start
LH: loop header
LB: loop body
LE: loop exit
PB: predicated region body
PF: predicated region fallthrough
CT: control target
= control target key end

     0   :  { %vm36_vm0 = vcmask 1040384   ;;  %vm3339_vm1 = vmmov 1   ;;  %v3340_v3 = vmov 0.0   ;;  %v3341_v8 = vmov 0   ;;  %s3342_s9 = smov 127   ;;  %s3343_s10 = smov 126   ;;  %s4245_s0 = inlined_call_operand.vmem [shape: f32[2,9,512], index: 0, kind: input, shape index: {}]   ;;  %s4246_s3 = inlined_call_operand.vmem [shape: f32[2,5,8,1], index: 3, kind: input, shape index: {}]   ;;  %s4247_s1 = inlined_call_operand.vmem [shape: f32[2,8,9], index: 1, kind: input, shape index: {}]   ;;  %s4248_s2 = inlined_call_operand.vmem [shape: f32[2,4,8,72], index: 2, kind: input, shape index: {}]   ;;  %s4249_s4 = inlined_call_operand.vmem [shape: f32[2,8,512], index: 4, kind: output, shape index: {}]  }
   0x1   :  { %v19_v0 = vld [vmem:[%s4245_s0 + $0x8] sm:$0xff]  ;;  %vm3381_vm2 = vmpackc.low %vm36_vm0, %vm3339_vm1  ;;  %113 = vmatprep.mubr.f32.mxu0 %v3340_v3  ;;  %184 = vmatprep.mubr.f32.mxu1 %v3340_v3  ;;  %v21_v5 = vld [vmem:[%s4245_s0 + $0x18] sm:$0xff]  ;;  %vm32_vm3 = vcmask 72704   ;;  %s3344_s11 = smov 112   ;;  %s3345_s12 = smov 111   ;;  %v203_v33 = vlaneseq  ;;  %vm309_vm12 = vcmask 588800  }
   0x2   :  { %v23_v1 = vld [vmem:[%s4245_s0 + $0x28] sm:$0x1]  ;;  %v25_v6 = vld [vmem:[%s4245_s0 + $0x38] sm:$0x1]  ;;  %v18_v7 = vld [vmem:[%s4245_s0] sm:$0xff]  ;;  %2777 = vset.pattern.permute.xlu0 %v3341_v8  ;;  %2848 = vset.pattern.permute.xlu1 %v3341_v8  ;;  %s3346_s13 = smov 110  }
   0x3   :  { %v2486_v4 = vpack.c.bf16 %v23_v1, %v19_v0  ;;  %v2492_v9 = vpack.c.bf16 %v25_v6, %v21_v5  ;;  %v22_v10 = vld [vmem:[%s4245_s0 + $0x20] sm:$0x1]  ;;  %v20_v11 = vld [vmem:[%s4245_s0 + $0x10] sm:$0xff]  ;;  %s3347_s14 = smov 96   ;;  %s3348_s15 = smov 95   ;;  %v2435_v32 = vld [vmem:[%s4246_s3 + $0x8] sm:$0xff] }
   0x4   :  { %v24_v12 = vld [vmem:[%s4245_s0 + $0x30] sm:$0x1]  ;;  %v2489_v13 = vpack.c.bf16 %v22_v10, %v18_v7  ;;  %v26_v15 = vld [vmem:[%s4246_s3] sm:$0xff]  ;;  %s3349_s16 = smov 94   ;;  %v3444_v34 = vand.u32 127, %v203_v33 }
   0x5   :  { %2488 = vmatprep.subr.msk.bf16.mxu0 %vm3381_vm2, %v2486_v4  ;;  %v2495_v14 = vpack.c.bf16 %v24_v12, %v20_v11  ;;  %2494 = vmatprep.subr.msk.bf16.mxu1 %vm3381_vm2, %v2492_v9  ;;  %v17_v16 = vld [vmem:[%s4247_s1] sm:$0xff] }
   0x6   :  { %29 = vperm.xlu0 %2777, %v26_v15   ;;  %2491 = vmatpush1.bf16.msk.msra.mxu0 %vm3381_vm2, %v2489_v13  ;;  %vm205_vm4 = vcmp.lt.s32.totalorder %v3444_v34, 127  ;;  %vm218_vm5 = vcmp.lt.s32.totalorder %v3444_v34, 126  ;;  %vm231_vm6 = vcmp.lt.s32.totalorder %v3444_v34, 112  ;;  %vm244_vm7 = vcmp.lt.s32.totalorder %v3444_v34, 111 }
   0x7   :  { %2497 = vmatpush1.bf16.msk.msra.mxu1 %vm3381_vm2, %v2495_v14  ;;  %vm257_vm8 = vcmp.lt.s32.totalorder %v3444_v34, 110  ;;  %vm270_vm9 = vcmp.lt.s32.totalorder %v3444_v34, 96  ;;  %vm283_vm10 = vcmp.lt.s32.totalorder %v3444_v34, 95  ;;  %vm296_vm11 = vcmp.lt.s32.totalorder %v3444_v34, 94 }
   0x9   :  { %2431 = vmatmul.mubr.msk.f32.vlgmr.msra.gmra.mrb[0].mxu0 %vm32_vm3, %v17_v16 }
   0xa   :  { %2434 = vmatmul.mubr.msk.f32.vlgmr.msra.gmra.mrb[0].mxu1 %vm32_vm3, %v17_v16  ;;  %377 = vmatprep.mubr.f32.mxu0 %v3340_v3 }
   0xb   :  { %448 = vmatprep.mubr.f32.mxu1 %v3340_v3 }
  0x85   :  { %v30_v17 = vpop.permute.xlu0 %29 }
  0xdc   :  { %v115_v18 = vpop.f32.mrb[0].mxu0 }
  0xdd   :  { %v186_v19 = vpop.f32.mrb[0].mxu1  ;;  %v116_v20 = vadd.f32 %v115_v18, %v30_v17  ;;  %v117_v22 = vpop.f32.mrb[1].mxu0 }
  0xde   :  { %v187_v21 = vadd.f32 %v186_v19, %v30_v17  ;;  %v188_v23 = vpop.f32.mrb[1].mxu1  ;;  %v118_v24 = vadd.f32 %v117_v22, %v30_v17 }
  0xdf   :  { %v189_v25 = vadd.f32 %v188_v23, %v30_v17  ;;  %v191_v26 = vmax.f32 %v116_v20, 0.0 }
  0xe0   :  { %v193_v27 = vmax.f32 %v187_v21, 0.0  ;;  %v192_v28 = vmax.f32 %v118_v24, 0.0 }
  0xe1   :  { %v194_v29 = vmax.f32 %v189_v25, 0.0 }
  0xe2   :  { %v2778_v31 = vpack.i.bf16 %v192_v28, %v191_v26 }
  0xe3   :  { %v2783_v30 = vpack.i.bf16 %v194_v29, %v193_v27 }
  0xe4   :  { %2779 = vrot.lane.b32.xlu0 %v2778_v31, %s3342_s9 }
  0xe5   :  { %2784 = vrot.lane.b32.xlu1 %v2783_v30, %s3342_s9 }
  0xe8   :  { %2794 = vrot.lane.b32.xlu0 %v2783_v30, %s3343_s10 }
  0xe9   :  { %2789 = vrot.lane.b32.xlu1 %v2778_v31, %s3343_s10 }
  0xec   :  { %2804 = vrot.lane.b32.xlu0 %v2783_v30, %s3344_s11 }
  0xed   :  { %2799 = vrot.lane.b32.xlu1 %v2778_v31, %s3344_s11 }
  0xf0   :  { %2814 = vrot.lane.b32.xlu0 %v2783_v30, %s3345_s12 }
  0xf1   :  { %2809 = vrot.lane.b32.xlu1 %v2778_v31, %s3345_s12 }
  0xf4   :  { %2824 = vrot.lane.b32.xlu0 %v2783_v30, %s3346_s13 }
  0xf5   :  { %2819 = vrot.lane.b32.xlu1 %v2778_v31, %s3346_s13 }
  0xf8   :  { %2834 = vrot.lane.b32.xlu0 %v2783_v30, %s3347_s14 }
  0xf9   :  { %2829 = vrot.lane.b32.xlu1 %v2778_v31, %s3347_s14 }
  0xfc   :  { %2844 = vrot.lane.b32.xlu0 %v2783_v30, %s3348_s15 }
  0xfd   :  { %2839 = vrot.lane.b32.xlu1 %v2778_v31, %s3348_s15 }
 0x100   :  { %290 = vrot.lane.b32.xlu0 %v192_v28, %s3349_s16 }
 0x101   :  { %288 = vrot.lane.b32.xlu1 %v191_v26, %s3349_s16 }
 0x104   :  { %294 = vrot.lane.b32.xlu0 %v194_v29, %s3349_s16 }
 0x105   :  { %292 = vrot.lane.b32.xlu1 %v193_v27, %s3349_s16 }
 0x109   :  { %306 = vperm.xlu1 %2848, %v2435_v32  }
 0x156   :  { %v2780_v36 = vpop.permute.xlu0 %2779 }
 0x157   :  { %v2785_v35 = vpop.permute.xlu1 %2784  ;;  %v2782_v39 = vunpack.i.h.bf16 %v2780_v36  ;;  %v2781_v40 = vunpack.i.l.bf16 %v2780_v36 }
 0x158   :  { %v2787_v37 = vunpack.i.h.bf16 %v2785_v35  ;;  %v2786_v38 = vunpack.i.l.bf16 %v2785_v35 }
 0x159   :  { %v208_v42 = vsel %vm205_vm4, %v2781_v40, %v2782_v39 }
 0x15a   :  { %v206_v41 = vsel %vm205_vm4, %v2786_v38, %v2787_v37  ;;  %v207_v43 = vsel %vm205_vm4, %v2782_v39, %v2786_v38  ;;  %v209_v44 = vsel %vm205_vm4, %v2787_v37, %v2781_v40  ;;  %v2795_v46 = vpop.permute.xlu0 %2794  ;;  %v2500_v49 = vpack.c.bf16 %v208_v42, %v191_v26 }
 0x15b   :  { %v2790_v45 = vpop.permute.xlu1 %2789  ;;  %v2498_v47 = vpack.c.bf16 %v207_v43, %v192_v28  ;;  %v2514_v48 = vpack.c.bf16 %v209_v44, %v194_v29  ;;  %v2516_v50 = vpack.c.bf16 %v206_v41, %v193_v27  ;;  %v2797_v53 = vunpack.i.h.bf16 %v2795_v46 }
 0x15c   :  { %v2792_v51 = vunpack.i.h.bf16 %v2790_v45  ;;  %v2791_v52 = vunpack.i.l.bf16 %v2790_v45  ;;  %v2796_v54 = vunpack.i.l.bf16 %v2795_v46 }
 0x15d   :  { %2499 = vmatprep.subr.bf16.mxu0 %v2498_v47  ;;  %2515 = vmatprep.subr.bf16.mxu1 %v2514_v48 }
 0x15e   :  { %2501 = vmatpush1.bf16.msra.mxu0 %v2500_v49  ;;  %2517 = vmatpush1.bf16.msra.mxu1 %v2516_v50  ;;  %v2805_v56 = vpop.permute.xlu0 %2804  ;;  %v221_v61 = vsel %vm218_vm5, %v2791_v52, %v2792_v51  ;;  %v219_v62 = vsel %vm218_vm5, %v2796_v54, %v2797_v53  ;;  %v220_v63 = vsel %vm218_vm5, %v2792_v51, %v2796_v54 }
 0x15f   :  { %v2800_v55 = vpop.permute.xlu1 %2799  ;;  %v2807_v59 = vunpack.i.h.bf16 %v2805_v56  ;;  %v2806_v60 = vunpack.i.l.bf16 %v2805_v56  ;;  %v222_v0 = vsel %vm218_vm5, %v2797_v53, %v2791_v52 }
 0x160   :  { %v2802_v57 = vunpack.i.h.bf16 %v2800_v55  ;;  %v2801_v58 = vunpack.i.l.bf16 %v2800_v55 }
 0x161   :  { %v232_v4 = vsel %vm231_vm6, %v2806_v60, %v2807_v59 }
 0x162   :  { %v234_v1 = vsel %vm231_vm6, %v2801_v58, %v2802_v57  ;;  %v233_v5 = vsel %vm231_vm6, %v2802_v57, %v2806_v60  ;;  %v235_v6 = vsel %vm231_vm6, %v2807_v59, %v2801_v58  ;;  %v2815_v8 = vpop.permute.xlu0 %2814  ;;  %v2520_v12 = vpack.c.bf16 %v232_v4, %v219_v62 }
 0x163   :  { %v2810_v7 = vpop.permute.xlu1 %2809  ;;  %v2502_v9 = vpack.c.bf16 %v233_v5, %v220_v63  ;;  %v2518_v10 = vpack.c.bf16 %v235_v6, %v222_v0  ;;  %v2504_v11 = vpack.c.bf16 %v234_v1, %v221_v61  ;;  %v2817_v15 = vunpack.i.h.bf16 %v2815_v8  ;;  %v301_v5 = vld [vmem:[%s4248_s2] sm:$0xff] }
 0x164   :  { %v2812_v13 = vunpack.i.h.bf16 %v2810_v7  ;;  %v2811_v14 = vunpack.i.l.bf16 %v2810_v7  ;;  %v2816_v16 = vunpack.i.l.bf16 %v2815_v8 }
 0x165   :  { %2503 = vmatprep.subr.bf16.mxu0 %v2502_v9  ;;  %2519 = vmatprep.subr.bf16.mxu1 %v2518_v10 }
 0x166   :  { %2505 = vmatpush1.bf16.msra.mxu0 %v2504_v11  ;;  %2521 = vmatpush1.bf16.msra.mxu1 %v2520_v12  ;;  %v2825_v18 = vpop.permute.xlu0 %2824  ;;  %v247_v23 = vsel %vm244_vm7, %v2811_v14, %v2812_v13  ;;  %v245_v24 = vsel %vm244_vm7, %v2816_v16, %v2817_v15  ;;  %v246_v25 = vsel %vm244_vm7, %v2812_v13, %v2816_v16 }
 0x167   :  { %v2820_v17 = vpop.permute.xlu1 %2819  ;;  %v2827_v21 = vunpack.i.h.bf16 %v2825_v18  ;;  %v2826_v22 = vunpack.i.l.bf16 %v2825_v18  ;;  %v248_v26 = vsel %vm244_vm7, %v2817_v15, %v2811_v14 }
 0x168   :  { %v2822_v19 = vunpack.i.h.bf16 %v2820_v17  ;;  %v2821_v20 = vunpack.i.l.bf16 %v2820_v17 }
 0x169   :  { %v258_v28 = vsel %vm257_vm8, %v2826_v22, %v2827_v21 }
 0x16a   :  { %v260_v27 = vsel %vm257_vm8, %v2821_v20, %v2822_v19  ;;  %v259_v29 = vsel %vm257_vm8, %v2822_v19, %v2826_v22  ;;  %v261_v30 = vsel %vm257_vm8, %v2827_v21, %v2821_v20  ;;  %v2835_v32 = vpop.permute.xlu0 %2834  ;;  %v2524_v37 = vpack.c.bf16 %v258_v28, %v245_v24  ;;  %v2439_v22 = vld [vmem:[%s4246_s3 + $0x10] sm:$0xff] }
 0x16b   :  { %v2830_v31 = vpop.permute.xlu1 %2829  ;;  %v2506_v33 = vpack.c.bf16 %v259_v29, %v246_v25  ;;  %v2522_v35 = vpack.c.bf16 %v261_v30, %v248_v26  ;;  %v2508_v36 = vpack.c.bf16 %v260_v27, %v247_v23  ;;  %v2837_v40 = vunpack.i.h.bf16 %v2835_v32 }
 0x16c   :  { %v2832_v38 = vunpack.i.h.bf16 %v2830_v31  ;;  %v2831_v39 = vunpack.i.l.bf16 %v2830_v31  ;;  %v2836_v41 = vunpack.i.l.bf16 %v2835_v32 }
 0x16d   :  { %2507 = vmatprep.subr.bf16.mxu0 %v2506_v33  ;;  %2523 = vmatprep.subr.bf16.mxu1 %v2522_v35 }
 0x16e   :  { %2509 = vmatpush1.bf16.msra.mxu0 %v2508_v36  ;;  %2525 = vmatpush1.bf16.msra.mxu1 %v2524_v37  ;;  %v2845_v43 = vpop.permute.xlu0 %2844  ;;  %v273_v48 = vsel %vm270_vm9, %v2831_v39, %v2832_v38  ;;  %v271_v49 = vsel %vm270_vm9, %v2836_v41, %v2837_v40  ;;  %v272_v50 = vsel %vm270_vm9, %v2832_v38, %v2836_v41 }
 0x16f   :  { %v2840_v42 = vpop.permute.xlu1 %2839  ;;  %v2847_v46 = vunpack.i.h.bf16 %v2845_v43  ;;  %v2846_v47 = vunpack.i.l.bf16 %v2845_v43  ;;  %v274_v51 = vsel %vm270_vm9, %v2837_v40, %v2831_v39 }
 0x170   :  { %v2842_v44 = vunpack.i.h.bf16 %v2840_v42  ;;  %v2841_v45 = vunpack.i.l.bf16 %v2840_v42 }
 0x171   :  { %v284_v53 = vsel %vm283_vm10, %v2846_v47, %v2847_v46 }
 0x172   :  { %v286_v52 = vsel %vm283_vm10, %v2841_v45, %v2842_v44  ;;  %v285_v54 = vsel %vm283_vm10, %v2842_v44, %v2846_v47  ;;  %v287_v55 = vsel %vm283_vm10, %v2847_v46, %v2841_v45  ;;  %v291_v57 = vpop.permute.xlu0 %290  ;;  %v2528_v61 = vpack.c.bf16 %v284_v53, %v271_v49 }
 0x173   :  { %v289_v56 = vpop.permute.xlu1 %288  ;;  %v2510_v58 = vpack.c.bf16 %v285_v54, %v272_v50  ;;  %v2526_v59 = vpack.c.bf16 %v287_v55, %v274_v51  ;;  %v2512_v60 = vpack.c.bf16 %v286_v52, %v273_v48 }
 0x174   :  { %v299_v6 = vsel %vm296_vm11, %v289_v56, %v291_v57 }
 0x175   :  { %2511 = vmatprep.subr.bf16.mxu0 %v2510_v58  ;;  %2527 = vmatprep.subr.bf16.mxu1 %v2526_v59 }
 0x176   :  { %2513 = vmatpush1.bf16.msra.mxu0 %v2512_v60  ;;  %2529 = vmatpush1.bf16.msra.mxu1 %v2528_v61  ;;  %v295_v63 = vpop.permute.xlu0 %294 }
 0x177   :  { %v293_v62 = vpop.permute.xlu1 %292  ;;  %v300_v1 = vsel %vm296_vm11, %v295_v63, %v289_v56 }
 0x178   :  { %v298_v0 = vsel %vm296_vm11, %v291_v57, %v293_v62  ;;  %v297_v4 = vsel %vm296_vm11, %v293_v62, %v295_v63  ;;  %400 = vmatprep.subr.mxu1 %v300_v1 }
 0x179   :  { %329 = vmatprep.subr.mxu0 %v298_v0 }
 0x17a   :  { %330 = vmatpush1.msra.mxu0 %v299_v6  ;;  %401 = vmatpush1.msra.mxu1 %v297_v4 }
 0x17b   :  { %2436 = vmatmul.mubr.msk.f32.vlgmr.msra.gmra.mrb[2].mxu0 %vm309_vm12, %v301_v5  ;;  %2437 = vmatmul.mubr.msk.f32.vlgmr.msra.gmra.mrb[2].mxu1 %vm309_vm12, %v301_v5 }
 0x17c   :  { %631 = vmatprep.mubr.f32.mxu0 %v3340_v3  ;;  %702 = vmatprep.mubr.f32.mxu1 %v3340_v3 }
 0x188   :  { %v307_v7 = vpop.permute.xlu1 %306 }
 0x24e   :  { %v379_v8 = vpop.f32.mrb[2].mxu0  ;;  %v450_v9 = vpop.f32.mrb[2].mxu1 }
 0x24f   :  { %v380_v10 = vadd.f32 %v379_v8, %v307_v7  ;;  %v451_v11 = vadd.f32 %v450_v9, %v307_v7  ;;  %v381_v12 = vpop.f32.mrb[3].mxu0  ;;  %v452_v13 = vpop.f32.mrb[3].mxu1 }
 0x250   :  { %v382_v14 = vadd.f32 %v381_v12, %v307_v7  ;;  %v453_v15 = vadd.f32 %v452_v13, %v307_v7 }
 0x251   :  { %v455_v16 = vmax.f32 %v380_v10, 0.0  ;;  %v457_v17 = vmax.f32 %v451_v11, 0.0 }
 0x252   :  { %v456_v18 = vmax.f32 %v382_v14, 0.0  ;;  %v458_v19 = vmax.f32 %v453_v15, 0.0 }
 0x254   :  { %v2854_v20 = vpack.i.bf16 %v458_v19, %v457_v17  ;;  %v2849_v21 = vpack.i.bf16 %v456_v18, %v455_v16 }
 0x256   :  { %2855 = vrot.lane.b32.xlu1 %v2854_v20, %s3342_s9  ;;  %2850 = vrot.lane.b32.xlu0 %v2849_v21, %s3342_s9 }
 0x25a   :  { %2865 = vrot.lane.b32.xlu1 %v2854_v20, %s3343_s10  ;;  %2860 = vrot.lane.b32.xlu0 %v2849_v21, %s3343_s10 }
 0x25e   :  { %2875 = vrot.lane.b32.xlu1 %v2854_v20, %s3344_s11  ;;  %2870 = vrot.lane.b32.xlu0 %v2849_v21, %s3344_s11 }
 0x262   :  { %2885 = vrot.lane.b32.xlu1 %v2854_v20, %s3345_s12  ;;  %2880 = vrot.lane.b32.xlu0 %v2849_v21, %s3345_s12 }
 0x266   :  { %2895 = vrot.lane.b32.xlu1 %v2854_v20, %s3346_s13  ;;  %2890 = vrot.lane.b32.xlu0 %v2849_v21, %s3346_s13 }
 0x26a   :  { %2905 = vrot.lane.b32.xlu1 %v2854_v20, %s3347_s14  ;;  %2900 = vrot.lane.b32.xlu0 %v2849_v21, %s3347_s14 }
 0x26e   :  { %2915 = vrot.lane.b32.xlu1 %v2854_v20, %s3348_s15  ;;  %2910 = vrot.lane.b32.xlu0 %v2849_v21, %s3348_s15 }
 0x272   :  { %545 = vrot.lane.b32.xlu1 %v456_v18, %s3349_s16  ;;  %543 = vrot.lane.b32.xlu0 %v455_v16, %s3349_s16 }
 0x276   :  { %549 = vrot.lane.b32.xlu1 %v458_v19, %s3349_s16  ;;  %547 = vrot.lane.b32.xlu0 %v457_v17, %s3349_s16 }
 0x27a   :  { %561 = vperm.xlu0 %2777, %v2439_v22  }
 0x2c8   :  { %v2856_v23 = vpop.permute.xlu1 %2855  ;;  %v2851_v24 = vpop.permute.xlu0 %2850 }
 0x2c9   :  { %v2858_v25 = vunpack.i.h.bf16 %v2856_v23  ;;  %v2857_v26 = vunpack.i.l.bf16 %v2856_v23  ;;  %v2853_v27 = vunpack.i.h.bf16 %v2851_v24  ;;  %v2852_v28 = vunpack.i.l.bf16 %v2851_v24 }
 0x2cb   :  { %v467_v29 = vsel %vm205_vm4, %v2857_v26, %v2858_v25  ;;  %v469_v30 = vsel %vm205_vm4, %v2852_v28, %v2853_v27  ;;  %v468_v31 = vsel %vm205_vm4, %v2853_v27, %v2857_v26  ;;  %v470_v32 = vsel %vm205_vm4, %v2858_v25, %v2852_v28 }
 0x2cc   :  { %v2866_v33 = vpop.permute.xlu1 %2865  ;;  %v2861_v35 = vpop.permute.xlu0 %2860  ;;  %v2530_v36 = vpack.c.bf16 %v468_v31, %v456_v18  ;;  %v2546_v37 = vpack.c.bf16 %v470_v32, %v458_v19  ;;  %v2532_v38 = vpack.c.bf16 %v469_v30, %v455_v16  ;;  %v2548_v39 = vpack.c.bf16 %v467_v29, %v457_v17 }
 0x2cd   :  { %v2868_v40 = vunpack.i.h.bf16 %v2866_v33  ;;  %v2867_v41 = vunpack.i.l.bf16 %v2866_v33  ;;  %v2863_v42 = vunpack.i.h.bf16 %v2861_v35  ;;  %v2862_v43 = vunpack.i.l.bf16 %v2861_v35 }
 0x2ce   :  { %2531 = vmatprep.subr.bf16.mxu0 %v2530_v36  ;;  %2547 = vmatprep.subr.bf16.mxu1 %v2546_v37 }
 0x2cf   :  { %2533 = vmatpush1.bf16.msra.mxu0 %v2532_v38  ;;  %2549 = vmatpush1.bf16.msra.mxu1 %v2548_v39  ;;  %v479_v50 = vsel %vm218_vm5, %v2867_v41, %v2868_v40  ;;  %v481_v51 = vsel %vm218_vm5, %v2862_v43, %v2863_v42  ;;  %v480_v52 = vsel %vm218_vm5, %v2863_v42, %v2867_v41 }
 0x2d0   :  { %v2876_v44 = vpop.permute.xlu1 %2875  ;;  %v2871_v45 = vpop.permute.xlu0 %2870  ;;  %v482_v53 = vsel %vm218_vm5, %v2868_v40, %v2862_v43 }
 0x2d1   :  { %v2878_v46 = vunpack.i.h.bf16 %v2876_v44  ;;  %v2877_v47 = vunpack.i.l.bf16 %v2876_v44  ;;  %v2873_v48 = vunpack.i.h.bf16 %v2871_v45  ;;  %v2872_v49 = vunpack.i.l.bf16 %v2871_v45 }
 0x2d3   :  { %v491_v54 = vsel %vm231_vm6, %v2877_v47, %v2878_v46  ;;  %v493_v55 = vsel %vm231_vm6, %v2872_v49, %v2873_v48  ;;  %v492_v56 = vsel %vm231_vm6, %v2873_v48, %v2877_v47  ;;  %v494_v57 = vsel %vm231_vm6, %v2878_v46, %v2872_v49 }
 0x2d4   :  { %v2886_v58 = vpop.permute.xlu1 %2885  ;;  %v2881_v59 = vpop.permute.xlu0 %2880  ;;  %v2534_v60 = vpack.c.bf16 %v492_v56, %v480_v52  ;;  %v2550_v61 = vpack.c.bf16 %v494_v57, %v482_v53  ;;  %v2536_v62 = vpack.c.bf16 %v493_v55, %v481_v51  ;;  %v2552_v63 = vpack.c.bf16 %v491_v54, %v479_v50  ;;  %v2438_v56 = vld [vmem:[%s4248_s2 + $0x8] sm:$0xff] }
 0x2d5   :  { %v2888_v0 = vunpack.i.h.bf16 %v2886_v58  ;;  %v2887_v1 = vunpack.i.l.bf16 %v2886_v58  ;;  %v2883_v4 = vunpack.i.h.bf16 %v2881_v59  ;;  %v2882_v5 = vunpack.i.l.bf16 %v2881_v59 }
 0x2d6   :  { %2535 = vmatprep.subr.bf16.mxu0 %v2534_v60  ;;  %2551 = vmatprep.subr.bf16.mxu1 %v2550_v61 }
 0x2d7   :  { %2537 = vmatpush1.bf16.msra.mxu0 %v2536_v62  ;;  %2553 = vmatpush1.bf16.msra.mxu1 %v2552_v63  ;;  %v503_v12 = vsel %vm244_vm7, %v2887_v1, %v2888_v0  ;;  %v505_v13 = vsel %vm244_vm7, %v2882_v5, %v2883_v4  ;;  %v504_v14 = vsel %vm244_vm7, %v2883_v4, %v2887_v1 }
 0x2d8   :  { %v2896_v6 = vpop.permute.xlu1 %2895  ;;  %v2891_v7 = vpop.permute.xlu0 %2890  ;;  %v506_v15 = vsel %vm244_vm7, %v2888_v0, %v2882_v5 }
 0x2d9   :  { %v2898_v8 = vunpack.i.h.bf16 %v2896_v6  ;;  %v2897_v9 = vunpack.i.l.bf16 %v2896_v6  ;;  %v2893_v10 = vunpack.i.h.bf16 %v2891_v7  ;;  %v2892_v11 = vunpack.i.l.bf16 %v2891_v7 }
 0x2db   :  { %v515_v16 = vsel %vm257_vm8, %v2897_v9, %v2898_v8  ;;  %v517_v17 = vsel %vm257_vm8, %v2892_v11, %v2893_v10  ;;  %v516_v18 = vsel %vm257_vm8, %v2893_v10, %v2897_v9  ;;  %v518_v19 = vsel %vm257_vm8, %v2898_v8, %v2892_v11  ;;  %v2443_v11 = vld [vmem:[%s4246_s3 + $0x18] sm:$0xff] }
 0x2dc   :  { %v2906_v20 = vpop.permute.xlu1 %2905  ;;  %v2901_v21 = vpop.permute.xlu0 %2900  ;;  %v2538_v22 = vpack.c.bf16 %v516_v18, %v504_v14  ;;  %v2554_v23 = vpack.c.bf16 %v518_v19, %v506_v15  ;;  %v2540_v24 = vpack.c.bf16 %v517_v17, %v505_v13  ;;  %v2556_v25 = vpack.c.bf16 %v515_v16, %v503_v12 }
 0x2dd   :  { %v2908_v26 = vunpack.i.h.bf16 %v2906_v20  ;;  %v2907_v27 = vunpack.i.l.bf16 %v2906_v20  ;;  %v2903_v28 = vunpack.i.h.bf16 %v2901_v21  ;;  %v2902_v29 = vunpack.i.l.bf16 %v2901_v21 }
 0x2de   :  { %2539 = vmatprep.subr.bf16.mxu0 %v2538_v22  ;;  %2555 = vmatprep.subr.bf16.mxu1 %v2554_v23 }
 0x2df   :  { %2541 = vmatpush1.bf16.msra.mxu0 %v2540_v24  ;;  %2557 = vmatpush1.bf16.msra.mxu1 %v2556_v25  ;;  %v527_v37 = vsel %vm270_vm9, %v2907_v27, %v2908_v26  ;;  %v529_v38 = vsel %vm270_vm9, %v2902_v29, %v2903_v28  ;;  %v528_v39 = vsel %vm270_vm9, %v2903_v28, %v2907_v27 }
 0x2e0   :  { %v2916_v30 = vpop.permute.xlu1 %2915  ;;  %v2911_v31 = vpop.permute.xlu0 %2910  ;;  %v530_v40 = vsel %vm270_vm9, %v2908_v26, %v2902_v29 }
 0x2e1   :  { %v2918_v32 = vunpack.i.h.bf16 %v2916_v30  ;;  %v2917_v33 = vunpack.i.l.bf16 %v2916_v30  ;;  %v2913_v35 = vunpack.i.h.bf16 %v2911_v31  ;;  %v2912_v36 = vunpack.i.l.bf16 %v2911_v31 }
 0x2e3   :  { %v539_v41 = vsel %vm283_vm10, %v2917_v33, %v2918_v32  ;;  %v541_v42 = vsel %vm283_vm10, %v2912_v36, %v2913_v35  ;;  %v540_v43 = vsel %vm283_vm10, %v2913_v35, %v2917_v33  ;;  %v542_v44 = vsel %vm283_vm10, %v2918_v32, %v2912_v36 }
 0x2e4   :  { %v546_v45 = vpop.permute.xlu1 %545  ;;  %v544_v46 = vpop.permute.xlu0 %543  ;;  %v2542_v47 = vpack.c.bf16 %v540_v43, %v528_v39  ;;  %v2558_v48 = vpack.c.bf16 %v542_v44, %v530_v40  ;;  %v2544_v49 = vpack.c.bf16 %v541_v42, %v529_v38  ;;  %v2560_v50 = vpack.c.bf16 %v539_v41, %v527_v37 }
 0x2e5   :  { %v553_v57 = vsel %vm296_vm11, %v544_v46, %v546_v45 }
 0x2e6   :  { %2543 = vmatprep.subr.bf16.mxu0 %v2542_v47  ;;  %2559 = vmatprep.subr.bf16.mxu1 %v2558_v48 }
 0x2e7   :  { %2545 = vmatpush1.bf16.msra.mxu0 %v2544_v49  ;;  %2561 = vmatpush1.bf16.msra.mxu1 %v2560_v50 }
 0x2e8   :  { %v550_v51 = vpop.permute.xlu1 %549  ;;  %v548_v52 = vpop.permute.xlu0 %547 }
 0x2e9   :  { %v552_v53 = vsel %vm296_vm11, %v546_v45, %v548_v52  ;;  %v554_v54 = vsel %vm296_vm11, %v550_v51, %v544_v46  ;;  %v551_v55 = vsel %vm296_vm11, %v548_v52, %v550_v51 }
 0x2ea   :  { %583 = vmatprep.subr.mxu0 %v552_v53  ;;  %654 = vmatprep.subr.mxu1 %v554_v54 }
 0x2eb   :  { %584 = vmatpush1.msra.mxu0 %v553_v57  ;;  %655 = vmatpush1.msra.mxu1 %v551_v55 }
 0x2ec   :  { %2440 = vmatmul.mubr.msk.f32.vlgmr.msra.gmra.mrb[4].mxu0 %vm309_vm12, %v2438_v56  ;;  %2441 = vmatmul.mubr.msk.f32.vlgmr.msra.gmra.mrb[4].mxu1 %vm309_vm12, %v2438_v56 }
 0x2ed   :  { %885 = vmatprep.mubr.f32.mxu0 %v3340_v3  ;;  %956 = vmatprep.mubr.f32.mxu1 %v3340_v3 }
 0x2f9   :  { %v562_v58 = vpop.permute.xlu0 %561 }
 0x3bf   :  { %v633_v59 = vpop.f32.mrb[4].mxu0  ;;  %v704_v60 = vpop.f32.mrb[4].mxu1 }
 0x3c0   :  { %v634_v61 = vadd.f32 %v633_v59, %v562_v58  ;;  %v705_v62 = vadd.f32 %v704_v60, %v562_v58  ;;  %v635_v63 = vpop.f32.mrb[5].mxu0  ;;  %v706_v0 = vpop.f32.mrb[5].mxu1 }
 0x3c1   :  { %v636_v1 = vadd.f32 %v635_v63, %v562_v58  ;;  %v707_v4 = vadd.f32 %v706_v0, %v562_v58 }
 0x3c2   :  { %v709_v5 = vmax.f32 %v634_v61, 0.0  ;;  %v711_v6 = vmax.f32 %v705_v62, 0.0 }
 0x3c3   :  { %v710_v7 = vmax.f32 %v636_v1, 0.0  ;;  %v712_v8 = vmax.f32 %v707_v4, 0.0 }
 0x3c5   :  { %v2924_v9 = vpack.i.bf16 %v712_v8, %v711_v6  ;;  %v2919_v10 = vpack.i.bf16 %v710_v7, %v709_v5 }
 0x3c7   :  { %2925 = vrot.lane.b32.xlu0 %v2924_v9, %s3342_s9  ;;  %2920 = vrot.lane.b32.xlu1 %v2919_v10, %s3342_s9 }
 0x3cb   :  { %2935 = vrot.lane.b32.xlu0 %v2924_v9, %s3343_s10  ;;  %2930 = vrot.lane.b32.xlu1 %v2919_v10, %s3343_s10 }
 0x3cf   :  { %2945 = vrot.lane.b32.xlu0 %v2924_v9, %s3344_s11  ;;  %2940 = vrot.lane.b32.xlu1 %v2919_v10, %s3344_s11 }
 0x3d3   :  { %2955 = vrot.lane.b32.xlu0 %v2924_v9, %s3345_s12  ;;  %2950 = vrot.lane.b32.xlu1 %v2919_v10, %s3345_s12 }
 0x3d7   :  { %2965 = vrot.lane.b32.xlu0 %v2924_v9, %s3346_s13  ;;  %2960 = vrot.lane.b32.xlu1 %v2919_v10, %s3346_s13 }
 0x3db   :  { %2975 = vrot.lane.b32.xlu0 %v2924_v9, %s3347_s14  ;;  %2970 = vrot.lane.b32.xlu1 %v2919_v10, %s3347_s14 }
 0x3df   :  { %2985 = vrot.lane.b32.xlu0 %v2924_v9, %s3348_s15  ;;  %2980 = vrot.lane.b32.xlu1 %v2919_v10, %s3348_s15 }
 0x3e3   :  { %799 = vrot.lane.b32.xlu0 %v710_v7, %s3349_s16  ;;  %797 = vrot.lane.b32.xlu1 %v709_v5, %s3349_s16 }
 0x3e7   :  { %803 = vrot.lane.b32.xlu0 %v712_v8, %s3349_s16  ;;  %801 = vrot.lane.b32.xlu1 %v711_v6, %s3349_s16 }
 0x3eb   :  { %815 = vperm.xlu1 %2848, %v2443_v11  }
 0x439   :  { %v2926_v12 = vpop.permute.xlu0 %2925  ;;  %v2921_v13 = vpop.permute.xlu1 %2920 }
 0x43a   :  { %v2928_v14 = vunpack.i.h.bf16 %v2926_v12  ;;  %v2927_v15 = vunpack.i.l.bf16 %v2926_v12  ;;  %v2923_v16 = vunpack.i.h.bf16 %v2921_v13  ;;  %v2922_v17 = vunpack.i.l.bf16 %v2921_v13 }
 0x43c   :  { %v721_v18 = vsel %vm205_vm4, %v2927_v15, %v2928_v14  ;;  %v723_v19 = vsel %vm205_vm4, %v2922_v17, %v2923_v16  ;;  %v722_v20 = vsel %vm205_vm4, %v2923_v16, %v2927_v15  ;;  %v724_v21 = vsel %vm205_vm4, %v2928_v14, %v2922_v17 }
 0x43d   :  { %v2936_v22 = vpop.permute.xlu0 %2935  ;;  %v2931_v23 = vpop.permute.xlu1 %2930  ;;  %v2562_v24 = vpack.c.bf16 %v722_v20, %v710_v7  ;;  %v2578_v25 = vpack.c.bf16 %v724_v21, %v712_v8  ;;  %v2564_v26 = vpack.c.bf16 %v723_v19, %v709_v5  ;;  %v2580_v27 = vpack.c.bf16 %v721_v18, %v711_v6 }
 0x43e   :  { %v2938_v28 = vunpack.i.h.bf16 %v2936_v22  ;;  %v2937_v29 = vunpack.i.l.bf16 %v2936_v22  ;;  %v2933_v30 = vunpack.i.h.bf16 %v2931_v23  ;;  %v2932_v31 = vunpack.i.l.bf16 %v2931_v23 }
 0x43f   :  { %2563 = vmatprep.subr.bf16.mxu0 %v2562_v24  ;;  %2579 = vmatprep.subr.bf16.mxu1 %v2578_v25 }
 0x440   :  { %2565 = vmatpush1.bf16.msra.mxu0 %v2564_v26  ;;  %2581 = vmatpush1.bf16.msra.mxu1 %v2580_v27  ;;  %v733_v39 = vsel %vm218_vm5, %v2937_v29, %v2938_v28  ;;  %v735_v40 = vsel %vm218_vm5, %v2932_v31, %v2933_v30  ;;  %v734_v41 = vsel %vm218_vm5, %v2933_v30, %v2937_v29 }
 0x441   :  { %v2946_v32 = vpop.permute.xlu0 %2945  ;;  %v2941_v33 = vpop.permute.xlu1 %2940  ;;  %v736_v42 = vsel %vm218_vm5, %v2938_v28, %v2932_v31 }
 0x442   :  { %v2948_v35 = vunpack.i.h.bf16 %v2946_v32  ;;  %v2947_v36 = vunpack.i.l.bf16 %v2946_v32  ;;  %v2943_v37 = vunpack.i.h.bf16 %v2941_v33  ;;  %v2942_v38 = vunpack.i.l.bf16 %v2941_v33 }
 0x444   :  { %v745_v43 = vsel %vm231_vm6, %v2947_v36, %v2948_v35  ;;  %v747_v44 = vsel %vm231_vm6, %v2942_v38, %v2943_v37  ;;  %v746_v45 = vsel %vm231_vm6, %v2943_v37, %v2947_v36  ;;  %v748_v46 = vsel %vm231_vm6, %v2948_v35, %v2942_v38 }
 0x445   :  { %v2956_v47 = vpop.permute.xlu0 %2955  ;;  %v2951_v48 = vpop.permute.xlu1 %2950  ;;  %v2566_v49 = vpack.c.bf16 %v746_v45, %v734_v41  ;;  %v2582_v50 = vpack.c.bf16 %v748_v46, %v736_v42  ;;  %v2568_v51 = vpack.c.bf16 %v747_v44, %v735_v40  ;;  %v2584_v52 = vpack.c.bf16 %v745_v43, %v733_v39  ;;  %v2442_v45 = vld [vmem:[%s4248_s2 + $0x10] sm:$0xff] }
 0x446   :  { %v2958_v53 = vunpack.i.h.bf16 %v2956_v47  ;;  %v2957_v54 = vunpack.i.l.bf16 %v2956_v47  ;;  %v2953_v55 = vunpack.i.h.bf16 %v2951_v48  ;;  %v2952_v56 = vunpack.i.l.bf16 %v2951_v48 }
 0x447   :  { %2567 = vmatprep.subr.bf16.mxu0 %v2566_v49  ;;  %2583 = vmatprep.subr.bf16.mxu1 %v2582_v50 }
 0x448   :  { %2569 = vmatpush1.bf16.msra.mxu0 %v2568_v51  ;;  %2585 = vmatpush1.bf16.msra.mxu1 %v2584_v52  ;;  %v757_v63 = vsel %vm244_vm7, %v2957_v54, %v2958_v53  ;;  %v759_v0 = vsel %vm244_vm7, %v2952_v56, %v2953_v55  ;;  %v758_v1 = vsel %vm244_vm7, %v2953_v55, %v2957_v54 }
 0x449   :  { %v2966_v57 = vpop.permute.xlu0 %2965  ;;  %v2961_v58 = vpop.permute.xlu1 %2960  ;;  %v760_v4 = vsel %vm244_vm7, %v2958_v53, %v2952_v56 }
 0x44a   :  { %v2968_v59 = vunpack.i.h.bf16 %v2966_v57  ;;  %v2967_v60 = vunpack.i.l.bf16 %v2966_v57  ;;  %v2963_v61 = vunpack.i.h.bf16 %v2961_v58  ;;  %v2962_v62 = vunpack.i.l.bf16 %v2961_v58 }
 0x44c   :  { %v769_v5 = vsel %vm257_vm8, %v2967_v60, %v2968_v59  ;;  %v771_v6 = vsel %vm257_vm8, %v2962_v62, %v2963_v61  ;;  %v770_v7 = vsel %vm257_vm8, %v2963_v61, %v2967_v60  ;;  %v772_v8 = vsel %vm257_vm8, %v2968_v59, %v2962_v62  ;;  %v2459_v62 = vld [vmem:[%s4246_s3 + $0x28] sm:$0xff] }
 0x44d   :  { %v2976_v9 = vpop.permute.xlu0 %2975  ;;  %v2971_v10 = vpop.permute.xlu1 %2970  ;;  %v2570_v11 = vpack.c.bf16 %v770_v7, %v758_v1  ;;  %v2586_v12 = vpack.c.bf16 %v772_v8, %v760_v4  ;;  %v2572_v13 = vpack.c.bf16 %v771_v6, %v759_v0  ;;  %v2588_v14 = vpack.c.bf16 %v769_v5, %v757_v63 }
 0x44e   :  { %v2978_v15 = vunpack.i.h.bf16 %v2976_v9  ;;  %v2977_v16 = vunpack.i.l.bf16 %v2976_v9  ;;  %v2973_v17 = vunpack.i.h.bf16 %v2971_v10  ;;  %v2972_v18 = vunpack.i.l.bf16 %v2971_v10 }
 0x44f   :  { %2571 = vmatprep.subr.bf16.mxu0 %v2570_v11  ;;  %2587 = vmatprep.subr.bf16.mxu1 %v2586_v12 }
 0x450   :  { %2573 = vmatpush1.bf16.msra.mxu0 %v2572_v13  ;;  %2589 = vmatpush1.bf16.msra.mxu1 %v2588_v14  ;;  %v781_v25 = vsel %vm270_vm9, %v2977_v16, %v2978_v15  ;;  %v783_v26 = vsel %vm270_vm9, %v2972_v18, %v2973_v17  ;;  %v782_v27 = vsel %vm270_vm9, %v2973_v17, %v2977_v16 }
 0x451   :  { %v2986_v19 = vpop.permute.xlu0 %2985  ;;  %v2981_v20 = vpop.permute.xlu1 %2980  ;;  %v784_v28 = vsel %vm270_vm9, %v2978_v15, %v2972_v18 }
 0x452   :  { %v2988_v21 = vunpack.i.h.bf16 %v2986_v19  ;;  %v2987_v22 = vunpack.i.l.bf16 %v2986_v19  ;;  %v2983_v23 = vunpack.i.h.bf16 %v2981_v20  ;;  %v2982_v24 = vunpack.i.l.bf16 %v2981_v20 }
 0x454   :  { %v793_v29 = vsel %vm283_vm10, %v2987_v22, %v2988_v21  ;;  %v795_v30 = vsel %vm283_vm10, %v2982_v24, %v2983_v23  ;;  %v794_v31 = vsel %vm283_vm10, %v2983_v23, %v2987_v22  ;;  %v796_v32 = vsel %vm283_vm10, %v2988_v21, %v2982_v24 }
 0x455   :  { %v800_v33 = vpop.permute.xlu0 %799  ;;  %v798_v35 = vpop.permute.xlu1 %797  ;;  %v2574_v36 = vpack.c.bf16 %v794_v31, %v782_v27  ;;  %v2590_v37 = vpack.c.bf16 %v796_v32, %v784_v28  ;;  %v2576_v38 = vpack.c.bf16 %v795_v30, %v783_v26  ;;  %v2592_v39 = vpack.c.bf16 %v793_v29, %v781_v25 }
 0x456   :  { %v807_v46 = vsel %vm296_vm11, %v798_v35, %v800_v33 }
 0x457   :  { %2575 = vmatprep.subr.bf16.mxu0 %v2574_v36  ;;  %2591 = vmatprep.subr.bf16.mxu1 %v2590_v37 }
 0x458   :  { %2577 = vmatpush1.bf16.msra.mxu0 %v2576_v38  ;;  %2593 = vmatpush1.bf16.msra.mxu1 %v2592_v39 }
 0x459   :  { %v804_v40 = vpop.permute.xlu0 %803  ;;  %v802_v41 = vpop.permute.xlu1 %801 }
 0x45a   :  { %v806_v42 = vsel %vm296_vm11, %v800_v33, %v802_v41  ;;  %v808_v43 = vsel %vm296_vm11, %v804_v40, %v798_v35  ;;  %v805_v44 = vsel %vm296_vm11, %v802_v41, %v804_v40 }
 0x45b   :  { %837 = vmatprep.subr.mxu0 %v806_v42  ;;  %908 = vmatprep.subr.mxu1 %v808_v43 }
 0x45c   :  { %838 = vmatpush1.msra.mxu0 %v807_v46  ;;  %909 = vmatpush1.msra.mxu1 %v805_v44 }
 0x45d   :  { %2444 = vmatmul.mubr.msk.f32.vlgmr.msra.gmra.mrb[6].mxu0 %vm309_vm12, %v2442_v45  ;;  %2445 = vmatmul.mubr.msk.f32.vlgmr.msra.gmra.mrb[6].mxu1 %vm309_vm12, %v2442_v45 }
 0x45e   :  { %1139 = vmatprep.mubr.f32.mxu0 %v3340_v3  ;;  %1210 = vmatprep.mubr.f32.mxu1 %v3340_v3 }
 0x46a   :  { %v816_v47 = vpop.permute.xlu1 %815 }
 0x530   :  { %v887_v48 = vpop.f32.mrb[6].mxu0  ;;  %v958_v49 = vpop.f32.mrb[6].mxu1 }
 0x531   :  { %v888_v50 = vadd.f32 %v887_v48, %v816_v47  ;;  %v959_v51 = vadd.f32 %v958_v49, %v816_v47  ;;  %v889_v52 = vpop.f32.mrb[7].mxu0  ;;  %v960_v53 = vpop.f32.mrb[7].mxu1 }
 0x532   :  { %v890_v54 = vadd.f32 %v889_v52, %v816_v47  ;;  %v961_v55 = vadd.f32 %v960_v53, %v816_v47 }
 0x533   :  { %v963_v56 = vmax.f32 %v888_v50, 0.0  ;;  %v965_v57 = vmax.f32 %v959_v51, 0.0 }
 0x534   :  { %v964_v58 = vmax.f32 %v890_v54, 0.0  ;;  %v966_v59 = vmax.f32 %v961_v55, 0.0 }
 0x536   :  { %v2994_v60 = vpack.i.bf16 %v966_v59, %v965_v57  ;;  %v2989_v61 = vpack.i.bf16 %v964_v58, %v963_v56 }
 0x538   :  { %2995 = vrot.lane.b32.xlu1 %v2994_v60, %s3342_s9  ;;  %2990 = vrot.lane.b32.xlu0 %v2989_v61, %s3342_s9 }
 0x53c   :  { %3005 = vrot.lane.b32.xlu1 %v2994_v60, %s3343_s10  ;;  %3000 = vrot.lane.b32.xlu0 %v2989_v61, %s3343_s10 }
 0x540   :  { %3015 = vrot.lane.b32.xlu1 %v2994_v60, %s3344_s11  ;;  %3010 = vrot.lane.b32.xlu0 %v2989_v61, %s3344_s11 }
 0x544   :  { %3025 = vrot.lane.b32.xlu1 %v2994_v60, %s3345_s12  ;;  %3020 = vrot.lane.b32.xlu0 %v2989_v61, %s3345_s12 }
 0x548   :  { %3035 = vrot.lane.b32.xlu1 %v2994_v60, %s3346_s13  ;;  %3030 = vrot.lane.b32.xlu0 %v2989_v61, %s3346_s13 }
 0x54c   :  { %3045 = vrot.lane.b32.xlu1 %v2994_v60, %s3347_s14  ;;  %3040 = vrot.lane.b32.xlu0 %v2989_v61, %s3347_s14 }
 0x550   :  { %3055 = vrot.lane.b32.xlu1 %v2994_v60, %s3348_s15  ;;  %3050 = vrot.lane.b32.xlu0 %v2989_v61, %s3348_s15 }
 0x554   :  { %1053 = vrot.lane.b32.xlu1 %v964_v58, %s3349_s16  ;;  %1051 = vrot.lane.b32.xlu0 %v963_v56, %s3349_s16 }
 0x558   :  { %1057 = vrot.lane.b32.xlu1 %v966_v59, %s3349_s16  ;;  %1055 = vrot.lane.b32.xlu0 %v965_v57, %s3349_s16 }
 0x55c   :  { %1240 = vperm.xlu0 %2777, %v2459_v62  }
 0x5aa   :  { %v2996_v63 = vpop.permute.xlu1 %2995  ;;  %v2991_v0 = vpop.permute.xlu0 %2990 }
 0x5ab   :  { %v2998_v1 = vunpack.i.h.bf16 %v2996_v63  ;;  %v2997_v4 = vunpack.i.l.bf16 %v2996_v63  ;;  %v2993_v5 = vunpack.i.h.bf16 %v2991_v0  ;;  %v2992_v6 = vunpack.i.l.bf16 %v2991_v0 }
 0x5ad   :  { %v975_v7 = vsel %vm205_vm4, %v2997_v4, %v2998_v1  ;;  %v977_v8 = vsel %vm205_vm4, %v2992_v6, %v2993_v5  ;;  %v976_v9 = vsel %vm205_vm4, %v2993_v5, %v2997_v4  ;;  %v978_v10 = vsel %vm205_vm4, %v2998_v1, %v2992_v6 }
 0x5ae   :  { %v2612_v11 = vpack.c.bf16 %v975_v7, %v965_v57  ;;  %v2596_v12 = vpack.c.bf16 %v977_v8, %v963_v56  ;;  %v3006_v13 = vpop.permute.xlu1 %3005  ;;  %v3001_v14 = vpop.permute.xlu0 %3000  ;;  %v2594_v15 = vpack.c.bf16 %v976_v9, %v964_v58  ;;  %v2610_v16 = vpack.c.bf16 %v978_v10, %v966_v59 }
 0x5af   :  { %v3008_v17 = vunpack.i.h.bf16 %v3006_v13  ;;  %v3007_v18 = vunpack.i.l.bf16 %v3006_v13  ;;  %v3003_v19 = vunpack.i.h.bf16 %v3001_v14  ;;  %v3002_v20 = vunpack.i.l.bf16 %v3001_v14 }
 0x5b0   :  { %2595 = vmatprep.subr.bf16.mxu0 %v2594_v15  ;;  %2611 = vmatprep.subr.bf16.mxu1 %v2610_v16 }
 0x5b1   :  { %2597 = vmatpush1.bf16.msra.mxu0 %v2596_v12  ;;  %2613 = vmatpush1.bf16.msra.mxu1 %v2612_v11  ;;  %v987_v27 = vsel %vm218_vm5, %v3007_v18, %v3008_v17  ;;  %v989_v28 = vsel %vm218_vm5, %v3002_v20, %v3003_v19  ;;  %v988_v29 = vsel %vm218_vm5, %v3003_v19, %v3007_v18 }
 0x5b2   :  { %v3016_v21 = vpop.permute.xlu1 %3015  ;;  %v3011_v22 = vpop.permute.xlu0 %3010  ;;  %v990_v30 = vsel %vm218_vm5, %v3008_v17, %v3002_v20 }
 0x5b3   :  { %v3018_v23 = vunpack.i.h.bf16 %v3016_v21  ;;  %v3017_v24 = vunpack.i.l.bf16 %v3016_v21  ;;  %v3013_v25 = vunpack.i.h.bf16 %v3011_v22  ;;  %v3012_v26 = vunpack.i.l.bf16 %v3011_v22 }
 0x5b5   :  { %v999_v31 = vsel %vm231_vm6, %v3017_v24, %v3018_v23  ;;  %v1001_v32 = vsel %vm231_vm6, %v3012_v26, %v3013_v25  ;;  %v1000_v33 = vsel %vm231_vm6, %v3013_v25, %v3017_v24  ;;  %v1002_v35 = vsel %vm231_vm6, %v3018_v23, %v3012_v26 }
 0x5b6   :  { %v2616_v36 = vpack.c.bf16 %v999_v31, %v987_v27  ;;  %v2600_v37 = vpack.c.bf16 %v1001_v32, %v989_v28  ;;  %v3026_v38 = vpop.permute.xlu1 %3025  ;;  %v3021_v39 = vpop.permute.xlu0 %3020  ;;  %v2598_v40 = vpack.c.bf16 %v1000_v33, %v988_v29  ;;  %v2614_v41 = vpack.c.bf16 %v1002_v35, %v990_v30  ;;  %v2452_v28 = vld [vmem:[%s4245_s0 + $0x48] sm:$0xff]  ;;  %v2454_v30 = vld [vmem:[%s4245_s0 + $0x58] sm:$0xff]  ;;  %v2451_v32 = vld [vmem:[%s4245_s0 + $0x40] sm:$0xff] }
 0x5b7   :  { %v3028_v42 = vunpack.i.h.bf16 %v3026_v38  ;;  %v3027_v43 = vunpack.i.l.bf16 %v3026_v38  ;;  %v3023_v44 = vunpack.i.h.bf16 %v3021_v39  ;;  %v3022_v45 = vunpack.i.l.bf16 %v3021_v39  ;;  %v2456_v29 = vld [vmem:[%s4245_s0 + $0x68] sm:$0x1]  ;;  %v2458_v31 = vld [vmem:[%s4245_s0 + $0x78] sm:$0x1]  ;;  %v2455_v33 = vld [vmem:[%s4245_s0 + $0x60] sm:$0x1] }
 0x5b8   :  { %2599 = vmatprep.subr.bf16.mxu0 %v2598_v40  ;;  %2615 = vmatprep.subr.bf16.mxu1 %v2614_v41  ;;  %v2453_v35 = vld [vmem:[%s4245_s0 + $0x50] sm:$0xff]  ;;  %v2626_v39 = vpack.c.bf16 %v2456_v29, %v2452_v28 }
 0x5b9   :  { %2601 = vmatpush1.bf16.msra.mxu0 %v2600_v37  ;;  %2617 = vmatpush1.bf16.msra.mxu1 %v2616_v36  ;;  %v1011_v52 = vsel %vm244_vm7, %v3027_v43, %v3028_v42  ;;  %v1013_v53 = vsel %vm244_vm7, %v3022_v45, %v3023_v44  ;;  %v1012_v54 = vsel %vm244_vm7, %v3023_v44, %v3027_v43  ;;  %v2457_v36 = vld [vmem:[%s4245_s0 + $0x70] sm:$0x1]  ;;  %v2446_v43 = vld [vmem:[%s4248_s2 + $0x18] sm:$0xff] }
 0x5ba   :  { %v3036_v46 = vpop.permute.xlu1 %3035  ;;  %v3031_v47 = vpop.permute.xlu0 %3030  ;;  %v1014_v55 = vsel %vm244_vm7, %v3028_v42, %v3022_v45  ;;  %v2632_v44 = vpack.c.bf16 %v2458_v31, %v2454_v30 }
 0x5bb   :  { %v3038_v48 = vunpack.i.h.bf16 %v3036_v46  ;;  %v3037_v49 = vunpack.i.l.bf16 %v3036_v46  ;;  %v3033_v50 = vunpack.i.h.bf16 %v3031_v47  ;;  %v3032_v51 = vunpack.i.l.bf16 %v3031_v47 }
 0x5bc   :  { %v2629_v46 = vpack.c.bf16 %v2455_v33, %v2451_v32  ;;  %v2635_v47 = vpack.c.bf16 %v2457_v36, %v2453_v35 }
 0x5bd   :  { %v1023_v56 = vsel %vm257_vm8, %v3037_v49, %v3038_v48  ;;  %v1025_v57 = vsel %vm257_vm8, %v3032_v51, %v3033_v50  ;;  %v1024_v58 = vsel %vm257_vm8, %v3033_v50, %v3037_v49  ;;  %v1026_v59 = vsel %vm257_vm8, %v3038_v48, %v3032_v51  ;;  %v2450_v48 = vld [vmem:[%s4247_s1 + $0x8] sm:$0xff] }
 0x5be   :  { %v2620_v60 = vpack.c.bf16 %v1023_v56, %v1011_v52  ;;  %v2604_v61 = vpack.c.bf16 %v1025_v57, %v1013_v53  ;;  %v3046_v62 = vpop.permute.xlu1 %3045  ;;  %v3041_v63 = vpop.permute.xlu0 %3040  ;;  %v2602_v0 = vpack.c.bf16 %v1024_v58, %v1012_v54  ;;  %v2618_v1 = vpack.c.bf16 %v1026_v59, %v1014_v55 }
 0x5bf   :  { %v3048_v4 = vunpack.i.h.bf16 %v3046_v62  ;;  %v3047_v5 = vunpack.i.l.bf16 %v3046_v62  ;;  %v3043_v6 = vunpack.i.h.bf16 %v3041_v63  ;;  %v3042_v7 = vunpack.i.l.bf16 %v3041_v63 }
 0x5c0   :  { %2603 = vmatprep.subr.bf16.mxu0 %v2602_v0  ;;  %2619 = vmatprep.subr.bf16.mxu1 %v2618_v1 }
 0x5c1   :  { %2605 = vmatpush1.bf16.msra.mxu0 %v2604_v61  ;;  %2621 = vmatpush1.bf16.msra.mxu1 %v2620_v60  ;;  %v1035_v14 = vsel %vm270_vm9, %v3047_v5, %v3048_v4  ;;  %v1037_v15 = vsel %vm270_vm9, %v3042_v7, %v3043_v6  ;;  %v1036_v16 = vsel %vm270_vm9, %v3043_v6, %v3047_v5  ;;  %v2467_v5 = vld [vmem:[%s4246_s3 + $0x30] sm:$0xff] }
 0x5c2   :  { %v3056_v8 = vpop.permute.xlu1 %3055  ;;  %v3051_v9 = vpop.permute.xlu0 %3050  ;;  %v1038_v17 = vsel %vm270_vm9, %v3048_v4, %v3042_v7 }
 0x5c3   :  { %v3058_v10 = vunpack.i.h.bf16 %v3056_v8  ;;  %v3057_v11 = vunpack.i.l.bf16 %v3056_v8  ;;  %v3053_v12 = vunpack.i.h.bf16 %v3051_v9  ;;  %v3052_v13 = vunpack.i.l.bf16 %v3051_v9 }
 0x5c5   :  { %v1047_v18 = vsel %vm283_vm10, %v3057_v11, %v3058_v10  ;;  %v1049_v19 = vsel %vm283_vm10, %v3052_v13, %v3053_v12  ;;  %v1048_v20 = vsel %vm283_vm10, %v3053_v12, %v3057_v11  ;;  %v1050_v21 = vsel %vm283_vm10, %v3058_v10, %v3052_v13 }
 0x5c6   :  { %v2624_v22 = vpack.c.bf16 %v1047_v18, %v1035_v14  ;;  %v2608_v23 = vpack.c.bf16 %v1049_v19, %v1037_v15  ;;  %v1054_v24 = vpop.permute.xlu1 %1053  ;;  %v1052_v25 = vpop.permute.xlu0 %1051  ;;  %v2606_v26 = vpack.c.bf16 %v1048_v20, %v1036_v16  ;;  %v2622_v27 = vpack.c.bf16 %v1050_v21, %v1038_v17 }
 0x5c7   :  { %v1061_v45 = vsel %vm296_vm11, %v1052_v25, %v1054_v24 }
 0x5c8   :  { %2607 = vmatprep.subr.bf16.mxu0 %v2606_v26  ;;  %2623 = vmatprep.subr.bf16.mxu1 %v2622_v27 }
 0x5c9   :  { %2609 = vmatpush1.bf16.msra.mxu0 %v2608_v23  ;;  %2625 = vmatpush1.bf16.msra.mxu1 %v2624_v22 }
 0x5ca   :  { %v1058_v37 = vpop.permute.xlu1 %1057  ;;  %v1056_v38 = vpop.permute.xlu0 %1055 }
 0x5cb   :  { %v1059_v40 = vsel %vm296_vm11, %v1056_v38, %v1058_v37  ;;  %v1060_v41 = vsel %vm296_vm11, %v1054_v24, %v1056_v38  ;;  %v1062_v42 = vsel %vm296_vm11, %v1058_v37, %v1052_v25 }
 0x5cc   :  { %1091 = vmatprep.subr.mxu0 %v1060_v41  ;;  %1162 = vmatprep.subr.mxu1 %v1062_v42 }
 0x5cd   :  { %1092 = vmatpush1.msra.mxu0 %v1061_v45  ;;  %1163 = vmatpush1.msra.mxu1 %v1059_v40 }
 0x5ce   :  { %2448 = vmatmul.mubr.msk.f32.vlgmr.msra.gmra.mrb[8].mxu0 %vm309_vm12, %v2446_v43  ;;  %2449 = vmatmul.mubr.msk.f32.vlgmr.msra.gmra.mrb[8].mxu1 %vm309_vm12, %v2446_v43 }
 0x5cf   :  { %2628 = vmatprep.subr.msk.bf16.mxu0 %vm3381_vm2, %v2626_v39  ;;  %2634 = vmatprep.subr.msk.bf16.mxu1 %vm3381_vm2, %v2632_v44 }
 0x5d0   :  { %2631 = vmatpush1.bf16.msk.msra.mxu0 %vm3381_vm2, %v2629_v46  ;;  %2637 = vmatpush1.bf16.msk.msra.mxu1 %vm3381_vm2, %v2635_v47 }
 0x5d1   :  { %1322 = vmatprep.mubr.f32.mxu0 %v3340_v3  ;;  %1393 = vmatprep.mubr.f32.mxu1 %v3340_v3 }
 0x5d3   :  { %2462 = vmatmul.mubr.msk.f32.vlgmr.msra.gmra.mrb[10].mxu0 %vm32_vm3, %v2450_v48  ;;  %2465 = vmatmul.mubr.msk.f32.vlgmr.msra.gmra.mrb[10].mxu1 %vm32_vm3, %v2450_v48 }
 0x5d4   :  { %1576 = vmatprep.mubr.f32.mxu0 %v3340_v3  ;;  %1647 = vmatprep.mubr.f32.mxu1 %v3340_v3 }
 0x5db   :  { %v1241_v52 = vpop.permute.xlu0 %1240 }
 0x6a1   :  { %v3840_v49 = vpop.f32.mrb[8].mxu0  ;;  %v3842_v50 = vpop.f32.mrb[8].mxu1 }
 0x6a2   :  { %v3844_v51 = vpop.f32.mrb[9].mxu0  ;;  %v3846_v2 = vpop.f32.mrb[9].mxu1 }
 0x6a6   :  { %v1324_v53 = vpop.f32.mrb[10].mxu0  ;;  %v1395_v54 = vpop.f32.mrb[10].mxu1 }
 0x6a7   :  { %v1325_v55 = vadd.f32 %v1324_v53, %v1241_v52  ;;  %v1396_v56 = vadd.f32 %v1395_v54, %v1241_v52  ;;  %v1326_v57 = vpop.f32.mrb[11].mxu0  ;;  %v1397_v58 = vpop.f32.mrb[11].mxu1 }
 0x6a8   :  { %v1327_v59 = vadd.f32 %v1326_v57, %v1241_v52  ;;  %v1398_v60 = vadd.f32 %v1397_v58, %v1241_v52 }
 0x6a9   :  { %v1400_v61 = vmax.f32 %v1325_v55, 0.0  ;;  %v1402_v62 = vmax.f32 %v1396_v56, 0.0 }
 0x6aa   :  { %v1401_v63 = vmax.f32 %v1327_v59, 0.0  ;;  %v1403_v0 = vmax.f32 %v1398_v60, 0.0 }
 0x6ac   :  { %v3064_v1 = vpack.i.bf16 %v1403_v0, %v1402_v62  ;;  %v3059_v4 = vpack.i.bf16 %v1401_v63, %v1400_v61 }
 0x6ae   :  { %3065 = vrot.lane.b32.xlu0 %v3064_v1, %s3342_s9  ;;  %3060 = vrot.lane.b32.xlu1 %v3059_v4, %s3342_s9 }
 0x6b2   :  { %3075 = vrot.lane.b32.xlu0 %v3064_v1, %s3343_s10  ;;  %3070 = vrot.lane.b32.xlu1 %v3059_v4, %s3343_s10 }
 0x6b6   :  { %3085 = vrot.lane.b32.xlu0 %v3064_v1, %s3344_s11  ;;  %3080 = vrot.lane.b32.xlu1 %v3059_v4, %s3344_s11 }
 0x6ba   :  { %3095 = vrot.lane.b32.xlu0 %v3064_v1, %s3345_s12  ;;  %3090 = vrot.lane.b32.xlu1 %v3059_v4, %s3345_s12 }
 0x6be   :  { %3105 = vrot.lane.b32.xlu0 %v3064_v1, %s3346_s13  ;;  %3100 = vrot.lane.b32.xlu1 %v3059_v4, %s3346_s13 }
 0x6c2   :  { %3115 = vrot.lane.b32.xlu0 %v3064_v1, %s3347_s14  ;;  %3110 = vrot.lane.b32.xlu1 %v3059_v4, %s3347_s14 }
 0x6c6   :  { %3125 = vrot.lane.b32.xlu0 %v3064_v1, %s3348_s15  ;;  %3120 = vrot.lane.b32.xlu1 %v3059_v4, %s3348_s15 }
 0x6ca   :  { %1490 = vrot.lane.b32.xlu0 %v1401_v63, %s3349_s16  ;;  %1488 = vrot.lane.b32.xlu1 %v1400_v61, %s3349_s16 }
 0x6ce   :  { %1494 = vrot.lane.b32.xlu0 %v1403_v0, %s3349_s16  ;;  %1492 = vrot.lane.b32.xlu1 %v1402_v62, %s3349_s16 }
 0x6d2   :  { %1506 = vperm.xlu1 %2848, %v2467_v5  }
 0x720   :  { %v3066_v6 = vpop.permute.xlu0 %3065  ;;  %v3061_v7 = vpop.permute.xlu1 %3060 }
 0x721   :  { %v3068_v8 = vunpack.i.h.bf16 %v3066_v6  ;;  %v3067_v9 = vunpack.i.l.bf16 %v3066_v6  ;;  %v3063_v10 = vunpack.i.h.bf16 %v3061_v7  ;;  %v3062_v11 = vunpack.i.l.bf16 %v3061_v7 }
 0x723   :  { %v1412_v12 = vsel %vm205_vm4, %v3067_v9, %v3068_v8  ;;  %v1414_v13 = vsel %vm205_vm4, %v3062_v11, %v3063_v10  ;;  %v1413_v14 = vsel %vm205_vm4, %v3063_v10, %v3067_v9  ;;  %v1415_v15 = vsel %vm205_vm4, %v3068_v8, %v3062_v11 }
 0x724   :  { %v2656_v16 = vpack.c.bf16 %v1412_v12, %v1402_v62  ;;  %v2640_v17 = vpack.c.bf16 %v1414_v13, %v1400_v61  ;;  %v3076_v18 = vpop.permute.xlu0 %3075  ;;  %v3071_v19 = vpop.permute.xlu1 %3070  ;;  %v2638_v20 = vpack.c.bf16 %v1413_v14, %v1401_v63  ;;  %v2654_v21 = vpack.c.bf16 %v1415_v15, %v1403_v0 }
 0x725   :  { %v3078_v22 = vunpack.i.h.bf16 %v3076_v18  ;;  %v3077_v23 = vunpack.i.l.bf16 %v3076_v18  ;;  %v3073_v24 = vunpack.i.h.bf16 %v3071_v19  ;;  %v3072_v25 = vunpack.i.l.bf16 %v3071_v19 }
 0x726   :  { %2639 = vmatprep.subr.bf16.mxu0 %v2638_v20  ;;  %2655 = vmatprep.subr.bf16.mxu1 %v2654_v21 }
 0x727   :  { %2641 = vmatpush1.bf16.msra.mxu0 %v2640_v17  ;;  %2657 = vmatpush1.bf16.msra.mxu1 %v2656_v16  ;;  %v1424_v32 = vsel %vm218_vm5, %v3077_v23, %v3078_v22  ;;  %v1426_v33 = vsel %vm218_vm5, %v3072_v25, %v3073_v24  ;;  %v1425_v35 = vsel %vm218_vm5, %v3073_v24, %v3077_v23 }
 0x728   :  { %v3086_v26 = vpop.permute.xlu0 %3085  ;;  %v3081_v27 = vpop.permute.xlu1 %3080  ;;  %v1427_v36 = vsel %vm218_vm5, %v3078_v22, %v3072_v25 }
 0x729   :  { %v3088_v28 = vunpack.i.h.bf16 %v3086_v26  ;;  %v3087_v29 = vunpack.i.l.bf16 %v3086_v26  ;;  %v3083_v30 = vunpack.i.h.bf16 %v3081_v27  ;;  %v3082_v31 = vunpack.i.l.bf16 %v3081_v27 }
 0x72b   :  { %v1436_v37 = vsel %vm231_vm6, %v3087_v29, %v3088_v28  ;;  %v1438_v38 = vsel %vm231_vm6, %v3082_v31, %v3083_v30  ;;  %v1437_v39 = vsel %vm231_vm6, %v3083_v30, %v3087_v29  ;;  %v1439_v40 = vsel %vm231_vm6, %v3088_v28, %v3082_v31 }
 0x72c   :  { %v2660_v41 = vpack.c.bf16 %v1436_v37, %v1424_v32  ;;  %v2644_v42 = vpack.c.bf16 %v1438_v38, %v1426_v33  ;;  %v3096_v43 = vpop.permute.xlu0 %3095  ;;  %v3091_v44 = vpop.permute.xlu1 %3090  ;;  %v2642_v45 = vpack.c.bf16 %v1437_v39, %v1425_v35  ;;  %v2658_v46 = vpack.c.bf16 %v1439_v40, %v1427_v36 }
 0x72d   :  { %v3098_v47 = vunpack.i.h.bf16 %v3096_v43  ;;  %v3097_v48 = vunpack.i.l.bf16 %v3096_v43  ;;  %v3093_v52 = vunpack.i.h.bf16 %v3091_v44  ;;  %v3092_v53 = vunpack.i.l.bf16 %v3091_v44 }
 0x72e   :  { %2643 = vmatprep.subr.bf16.mxu0 %v2642_v45  ;;  %2659 = vmatprep.subr.bf16.mxu1 %v2658_v46 }
 0x72f   :  { %2645 = vmatpush1.bf16.msra.mxu0 %v2644_v42  ;;  %2661 = vmatpush1.bf16.msra.mxu1 %v2660_v41  ;;  %v1448_v60 = vsel %vm244_vm7, %v3097_v48, %v3098_v47  ;;  %v1450_v61 = vsel %vm244_vm7, %v3092_v53, %v3093_v52  ;;  %v1449_v62 = vsel %vm244_vm7, %v3093_v52, %v3097_v48  ;;  %v2466_v42 = vld [vmem:[%s4248_s2 + $0x20] sm:$0xff] }
 0x730   :  { %v3106_v54 = vpop.permute.xlu0 %3105  ;;  %v3101_v55 = vpop.permute.xlu1 %3100  ;;  %v1451_v63 = vsel %vm244_vm7, %v3098_v47, %v3092_v53 }
 0x731   :  { %v3108_v56 = vunpack.i.h.bf16 %v3106_v54  ;;  %v3107_v57 = vunpack.i.l.bf16 %v3106_v54  ;;  %v3103_v58 = vunpack.i.h.bf16 %v3101_v55  ;;  %v3102_v59 = vunpack.i.l.bf16 %v3101_v55 }
 0x733   :  { %v1460_v0 = vsel %vm257_vm8, %v3107_v57, %v3108_v56  ;;  %v1462_v1 = vsel %vm257_vm8, %v3102_v59, %v3103_v58  ;;  %v1461_v4 = vsel %vm257_vm8, %v3103_v58, %v3107_v57  ;;  %v1463_v5 = vsel %vm257_vm8, %v3108_v56, %v3102_v59 }
 0x734   :  { %v2664_v6 = vpack.c.bf16 %v1460_v0, %v1448_v60  ;;  %v2648_v7 = vpack.c.bf16 %v1462_v1, %v1450_v61  ;;  %v3116_v8 = vpop.permute.xlu0 %3115  ;;  %v3111_v9 = vpop.permute.xlu1 %3110  ;;  %v2646_v10 = vpack.c.bf16 %v1461_v4, %v1449_v62  ;;  %v2662_v11 = vpack.c.bf16 %v1463_v5, %v1451_v63  ;;  %v2471_v62 = vld [vmem:[%s4246_s3 + $0x38] sm:$0xff] }
 0x735   :  { %v3118_v12 = vunpack.i.h.bf16 %v3116_v8  ;;  %v3117_v13 = vunpack.i.l.bf16 %v3116_v8  ;;  %v3113_v14 = vunpack.i.h.bf16 %v3111_v9  ;;  %v3112_v15 = vunpack.i.l.bf16 %v3111_v9 }
 0x736   :  { %2647 = vmatprep.subr.bf16.mxu0 %v2646_v10  ;;  %2663 = vmatprep.subr.bf16.mxu1 %v2662_v11 }
 0x737   :  { %2649 = vmatpush1.bf16.msra.mxu0 %v2648_v7  ;;  %2665 = vmatpush1.bf16.msra.mxu1 %v2664_v6  ;;  %v1472_v22 = vsel %vm270_vm9, %v3117_v13, %v3118_v12  ;;  %v1474_v23 = vsel %vm270_vm9, %v3112_v15, %v3113_v14  ;;  %v1473_v24 = vsel %vm270_vm9, %v3113_v14, %v3117_v13 }
 0x738   :  { %v3126_v16 = vpop.permute.xlu0 %3125  ;;  %v3121_v17 = vpop.permute.xlu1 %3120  ;;  %v1475_v25 = vsel %vm270_vm9, %v3118_v12, %v3112_v15 }
 0x739   :  { %v3128_v18 = vunpack.i.h.bf16 %v3126_v16  ;;  %v3127_v19 = vunpack.i.l.bf16 %v3126_v16  ;;  %v3123_v20 = vunpack.i.h.bf16 %v3121_v17  ;;  %v3122_v21 = vunpack.i.l.bf16 %v3121_v17 }
 0x73b   :  { %v1484_v26 = vsel %vm283_vm10, %v3127_v19, %v3128_v18  ;;  %v1486_v27 = vsel %vm283_vm10, %v3122_v21, %v3123_v20  ;;  %v1485_v28 = vsel %vm283_vm10, %v3123_v20, %v3127_v19  ;;  %v1487_v29 = vsel %vm283_vm10, %v3128_v18, %v3122_v21 }
 0x73c   :  { %v2668_v30 = vpack.c.bf16 %v1484_v26, %v1472_v22  ;;  %v2652_v31 = vpack.c.bf16 %v1486_v27, %v1474_v23  ;;  %v1491_v32 = vpop.permute.xlu0 %1490  ;;  %v1489_v33 = vpop.permute.xlu1 %1488  ;;  %v2650_v35 = vpack.c.bf16 %v1485_v28, %v1473_v24  ;;  %v2666_v36 = vpack.c.bf16 %v1487_v29, %v1475_v25 }
 0x73d   :  { %v1498_v43 = vsel %vm296_vm11, %v1489_v33, %v1491_v32 }
 0x73e   :  { %2651 = vmatprep.subr.bf16.mxu0 %v2650_v35  ;;  %2667 = vmatprep.subr.bf16.mxu1 %v2666_v36 }
 0x73f   :  { %2653 = vmatpush1.bf16.msra.mxu0 %v2652_v31  ;;  %2669 = vmatpush1.bf16.msra.mxu1 %v2668_v30 }
 0x740   :  { %v1495_v37 = vpop.permute.xlu0 %1494  ;;  %v1493_v38 = vpop.permute.xlu1 %1492 }
 0x741   :  { %v1496_v39 = vsel %vm296_vm11, %v1493_v38, %v1495_v37  ;;  %v1497_v40 = vsel %vm296_vm11, %v1491_v32, %v1493_v38  ;;  %v1499_v41 = vsel %vm296_vm11, %v1495_v37, %v1489_v33 }
 0x742   :  { %1528 = vmatprep.subr.mxu0 %v1497_v40  ;;  %1599 = vmatprep.subr.mxu1 %v1499_v41 }
 0x743   :  { %1529 = vmatpush1.msra.mxu0 %v1498_v43  ;;  %1600 = vmatpush1.msra.mxu1 %v1496_v39 }
 0x744   :  { %2468 = vmatmul.mubr.msk.f32.vlgmr.msra.gmra.mrb[12].mxu0 %vm309_vm12, %v2466_v42  ;;  %2469 = vmatmul.mubr.msk.f32.vlgmr.msra.gmra.mrb[12].mxu1 %vm309_vm12, %v2466_v42 }
 0x745   :  { %1830 = vmatprep.mubr.f32.mxu0 %v3340_v3  ;;  %1901 = vmatprep.mubr.f32.mxu1 %v3340_v3 }
 0x751   :  { %v1507_v44 = vpop.permute.xlu1 %1506 }
 0x817   :  { %v1578_v45 = vpop.f32.mrb[12].mxu0  ;;  %v1649_v46 = vpop.f32.mrb[12].mxu1 }
 0x818   :  { %v1579_v47 = vadd.f32 %v1578_v45, %v1507_v44  ;;  %v1650_v48 = vadd.f32 %v1649_v46, %v1507_v44  ;;  %v1580_v52 = vpop.f32.mrb[13].mxu0  ;;  %v1651_v53 = vpop.f32.mrb[13].mxu1 }
 0x819   :  { %v1581_v54 = vadd.f32 %v1580_v52, %v1507_v44  ;;  %v1652_v55 = vadd.f32 %v1651_v53, %v1507_v44 }
 0x81a   :  { %v1654_v56 = vmax.f32 %v1579_v47, 0.0  ;;  %v1656_v57 = vmax.f32 %v1650_v48, 0.0 }
 0x81b   :  { %v1655_v58 = vmax.f32 %v1581_v54, 0.0  ;;  %v1657_v59 = vmax.f32 %v1652_v55, 0.0 }
 0x81d   :  { %v3134_v60 = vpack.i.bf16 %v1657_v59, %v1656_v57  ;;  %v3129_v61 = vpack.i.bf16 %v1655_v58, %v1654_v56 }
 0x81f   :  { %3135 = vrot.lane.b32.xlu1 %v3134_v60, %s3342_s9  ;;  %3130 = vrot.lane.b32.xlu0 %v3129_v61, %s3342_s9 }
 0x823   :  { %3145 = vrot.lane.b32.xlu1 %v3134_v60, %s3343_s10  ;;  %3140 = vrot.lane.b32.xlu0 %v3129_v61, %s3343_s10 }
 0x827   :  { %3155 = vrot.lane.b32.xlu1 %v3134_v60, %s3344_s11  ;;  %3150 = vrot.lane.b32.xlu0 %v3129_v61, %s3344_s11 }
 0x82b   :  { %3165 = vrot.lane.b32.xlu1 %v3134_v60, %s3345_s12  ;;  %3160 = vrot.lane.b32.xlu0 %v3129_v61, %s3345_s12 }
 0x82f   :  { %3175 = vrot.lane.b32.xlu1 %v3134_v60, %s3346_s13  ;;  %3170 = vrot.lane.b32.xlu0 %v3129_v61, %s3346_s13 }
 0x833   :  { %3185 = vrot.lane.b32.xlu1 %v3134_v60, %s3347_s14  ;;  %3180 = vrot.lane.b32.xlu0 %v3129_v61, %s3347_s14 }
 0x837   :  { %3195 = vrot.lane.b32.xlu1 %v3134_v60, %s3348_s15  ;;  %3190 = vrot.lane.b32.xlu0 %v3129_v61, %s3348_s15 }
 0x83b   :  { %1744 = vrot.lane.b32.xlu1 %v1655_v58, %s3349_s16  ;;  %1742 = vrot.lane.b32.xlu0 %v1654_v56, %s3349_s16 }
 0x83f   :  { %1748 = vrot.lane.b32.xlu1 %v1657_v59, %s3349_s16  ;;  %1746 = vrot.lane.b32.xlu0 %v1656_v57, %s3349_s16 }
 0x843   :  { %1760 = vperm.xlu0 %2777, %v2471_v62  }
 0x891   :  { %v3136_v63 = vpop.permute.xlu1 %3135  ;;  %v3131_v0 = vpop.permute.xlu0 %3130 }
 0x892   :  { %v3138_v1 = vunpack.i.h.bf16 %v3136_v63  ;;  %v3137_v4 = vunpack.i.l.bf16 %v3136_v63  ;;  %v3133_v5 = vunpack.i.h.bf16 %v3131_v0  ;;  %v3132_v6 = vunpack.i.l.bf16 %v3131_v0 }
 0x894   :  { %v1666_v7 = vsel %vm205_vm4, %v3137_v4, %v3138_v1  ;;  %v1668_v8 = vsel %vm205_vm4, %v3132_v6, %v3133_v5  ;;  %v1667_v9 = vsel %vm205_vm4, %v3133_v5, %v3137_v4  ;;  %v1669_v10 = vsel %vm205_vm4, %v3138_v1, %v3132_v6 }
 0x895   :  { %v2688_v11 = vpack.c.bf16 %v1666_v7, %v1656_v57  ;;  %v2672_v12 = vpack.c.bf16 %v1668_v8, %v1654_v56  ;;  %v3146_v13 = vpop.permute.xlu1 %3145  ;;  %v3141_v14 = vpop.permute.xlu0 %3140  ;;  %v2670_v15 = vpack.c.bf16 %v1667_v9, %v1655_v58  ;;  %v2686_v16 = vpack.c.bf16 %v1669_v10, %v1657_v59 }
 0x896   :  { %v3148_v17 = vunpack.i.h.bf16 %v3146_v13  ;;  %v3147_v18 = vunpack.i.l.bf16 %v3146_v13  ;;  %v3143_v19 = vunpack.i.h.bf16 %v3141_v14  ;;  %v3142_v20 = vunpack.i.l.bf16 %v3141_v14 }
 0x897   :  { %2671 = vmatprep.subr.bf16.mxu0 %v2670_v15  ;;  %2687 = vmatprep.subr.bf16.mxu1 %v2686_v16 }
 0x898   :  { %2673 = vmatpush1.bf16.msra.mxu0 %v2672_v12  ;;  %2689 = vmatpush1.bf16.msra.mxu1 %v2688_v11  ;;  %v1678_v27 = vsel %vm218_vm5, %v3147_v18, %v3148_v17  ;;  %v1680_v28 = vsel %vm218_vm5, %v3142_v20, %v3143_v19  ;;  %v1679_v29 = vsel %vm218_vm5, %v3143_v19, %v3147_v18 }
 0x899   :  { %v3156_v21 = vpop.permute.xlu1 %3155  ;;  %v3151_v22 = vpop.permute.xlu0 %3150  ;;  %v1681_v30 = vsel %vm218_vm5, %v3148_v17, %v3142_v20 }
 0x89a   :  { %v3158_v23 = vunpack.i.h.bf16 %v3156_v21  ;;  %v3157_v24 = vunpack.i.l.bf16 %v3156_v21  ;;  %v3153_v25 = vunpack.i.h.bf16 %v3151_v22  ;;  %v3152_v26 = vunpack.i.l.bf16 %v3151_v22 }
 0x89c   :  { %v1690_v31 = vsel %vm231_vm6, %v3157_v24, %v3158_v23  ;;  %v1692_v32 = vsel %vm231_vm6, %v3152_v26, %v3153_v25  ;;  %v1691_v33 = vsel %vm231_vm6, %v3153_v25, %v3157_v24  ;;  %v1693_v35 = vsel %vm231_vm6, %v3158_v23, %v3152_v26 }
 0x89d   :  { %v2692_v36 = vpack.c.bf16 %v1690_v31, %v1678_v27  ;;  %v2676_v37 = vpack.c.bf16 %v1692_v32, %v1680_v28  ;;  %v3166_v38 = vpop.permute.xlu1 %3165  ;;  %v3161_v39 = vpop.permute.xlu0 %3160  ;;  %v2674_v40 = vpack.c.bf16 %v1691_v33, %v1679_v29  ;;  %v2690_v41 = vpack.c.bf16 %v1693_v35, %v1681_v30 }
 0x89e   :  { %v3168_v42 = vunpack.i.h.bf16 %v3166_v38  ;;  %v3167_v43 = vunpack.i.l.bf16 %v3166_v38  ;;  %v3163_v44 = vunpack.i.h.bf16 %v3161_v39  ;;  %v3162_v45 = vunpack.i.l.bf16 %v3161_v39 }
 0x89f   :  { %2675 = vmatprep.subr.bf16.mxu0 %v2674_v40  ;;  %2691 = vmatprep.subr.bf16.mxu1 %v2690_v41 }
 0x8a0   :  { %2677 = vmatpush1.bf16.msra.mxu0 %v2676_v37  ;;  %2693 = vmatpush1.bf16.msra.mxu1 %v2692_v36  ;;  %v1702_v55 = vsel %vm244_vm7, %v3167_v43, %v3168_v42  ;;  %v1704_v56 = vsel %vm244_vm7, %v3162_v45, %v3163_v44  ;;  %v1703_v57 = vsel %vm244_vm7, %v3163_v44, %v3167_v43  ;;  %v2470_v37 = vld [vmem:[%s4248_s2 + $0x28] sm:$0xff] }
 0x8a1   :  { %v3176_v46 = vpop.permute.xlu1 %3175  ;;  %v3171_v47 = vpop.permute.xlu0 %3170  ;;  %v1705_v58 = vsel %vm244_vm7, %v3168_v42, %v3162_v45 }
 0x8a2   :  { %v3178_v48 = vunpack.i.h.bf16 %v3176_v46  ;;  %v3177_v52 = vunpack.i.l.bf16 %v3176_v46  ;;  %v3173_v53 = vunpack.i.h.bf16 %v3171_v47  ;;  %v3172_v54 = vunpack.i.l.bf16 %v3171_v47 }
 0x8a4   :  { %v1714_v59 = vsel %vm257_vm8, %v3177_v52, %v3178_v48  ;;  %v1716_v60 = vsel %vm257_vm8, %v3172_v54, %v3173_v53  ;;  %v1715_v61 = vsel %vm257_vm8, %v3173_v53, %v3177_v52  ;;  %v1717_v62 = vsel %vm257_vm8, %v3178_v48, %v3172_v54 }
 0x8a5   :  { %v2696_v63 = vpack.c.bf16 %v1714_v59, %v1702_v55  ;;  %v2680_v0 = vpack.c.bf16 %v1716_v60, %v1704_v56  ;;  %v3186_v1 = vpop.permute.xlu1 %3185  ;;  %v3181_v4 = vpop.permute.xlu0 %3180  ;;  %v2678_v5 = vpack.c.bf16 %v1715_v61, %v1703_v57  ;;  %v2694_v6 = vpack.c.bf16 %v1717_v62, %v1705_v58  ;;  %v2475_v57 = vld [vmem:[%s4246_s3 + $0x40] sm:$0xff] }
 0x8a6   :  { %v3188_v7 = vunpack.i.h.bf16 %v3186_v1  ;;  %v3187_v8 = vunpack.i.l.bf16 %v3186_v1  ;;  %v3183_v9 = vunpack.i.h.bf16 %v3181_v4  ;;  %v3182_v10 = vunpack.i.l.bf16 %v3181_v4 }
 0x8a7   :  { %2679 = vmatprep.subr.bf16.mxu0 %v2678_v5  ;;  %2695 = vmatprep.subr.bf16.mxu1 %v2694_v6 }
 0x8a8   :  { %2681 = vmatpush1.bf16.msra.mxu0 %v2680_v0  ;;  %2697 = vmatpush1.bf16.msra.mxu1 %v2696_v63  ;;  %v1726_v17 = vsel %vm270_vm9, %v3187_v8, %v3188_v7  ;;  %v1728_v18 = vsel %vm270_vm9, %v3182_v10, %v3183_v9  ;;  %v1727_v19 = vsel %vm270_vm9, %v3183_v9, %v3187_v8 }
 0x8a9   :  { %v3196_v11 = vpop.permute.xlu1 %3195  ;;  %v3191_v12 = vpop.permute.xlu0 %3190  ;;  %v1729_v20 = vsel %vm270_vm9, %v3188_v7, %v3182_v10 }
 0x8aa   :  { %v3198_v13 = vunpack.i.h.bf16 %v3196_v11  ;;  %v3197_v14 = vunpack.i.l.bf16 %v3196_v11  ;;  %v3193_v15 = vunpack.i.h.bf16 %v3191_v12  ;;  %v3192_v16 = vunpack.i.l.bf16 %v3191_v12 }
 0x8ac   :  { %v1738_v21 = vsel %vm283_vm10, %v3197_v14, %v3198_v13  ;;  %v1740_v22 = vsel %vm283_vm10, %v3192_v16, %v3193_v15  ;;  %v1739_v23 = vsel %vm283_vm10, %v3193_v15, %v3197_v14  ;;  %v1741_v24 = vsel %vm283_vm10, %v3198_v13, %v3192_v16 }
 0x8ad   :  { %v2700_v25 = vpack.c.bf16 %v1738_v21, %v1726_v17  ;;  %v2684_v26 = vpack.c.bf16 %v1740_v22, %v1728_v18  ;;  %v1745_v27 = vpop.permute.xlu1 %1744  ;;  %v1743_v28 = vpop.permute.xlu0 %1742  ;;  %v2682_v29 = vpack.c.bf16 %v1739_v23, %v1727_v19  ;;  %v2698_v30 = vpack.c.bf16 %v1741_v24, %v1729_v20 }
 0x8ae   :  { %v1752_v38 = vsel %vm296_vm11, %v1743_v28, %v1745_v27 }
 0x8af   :  { %2683 = vmatprep.subr.bf16.mxu0 %v2682_v29  ;;  %2699 = vmatprep.subr.bf16.mxu1 %v2698_v30 }
 0x8b0   :  { %2685 = vmatpush1.bf16.msra.mxu0 %v2684_v26  ;;  %2701 = vmatpush1.bf16.msra.mxu1 %v2700_v25 }
 0x8b1   :  { %v1749_v31 = vpop.permute.xlu1 %1748  ;;  %v1747_v32 = vpop.permute.xlu0 %1746 }
 0x8b2   :  { %v1750_v33 = vsel %vm296_vm11, %v1747_v32, %v1749_v31  ;;  %v1751_v35 = vsel %vm296_vm11, %v1745_v27, %v1747_v32  ;;  %v1753_v36 = vsel %vm296_vm11, %v1749_v31, %v1743_v28 }
 0x8b3   :  { %1782 = vmatprep.subr.mxu0 %v1751_v35  ;;  %1853 = vmatprep.subr.mxu1 %v1753_v36 }
 0x8b4   :  { %1783 = vmatpush1.msra.mxu0 %v1752_v38  ;;  %1854 = vmatpush1.msra.mxu1 %v1750_v33 }
 0x8b5   :  { %2472 = vmatmul.mubr.msk.f32.vlgmr.msra.gmra.mrb[14].mxu0 %vm309_vm12, %v2470_v37  ;;  %2473 = vmatmul.mubr.msk.f32.vlgmr.msra.gmra.mrb[14].mxu1 %vm309_vm12, %v2470_v37 }
 0x8b6   :  { %2084 = vmatprep.mubr.f32.mxu0 %v3340_v3  ;;  %2155 = vmatprep.mubr.f32.mxu1 %v3340_v3 }
 0x8c2   :  { %v1761_v39 = vpop.permute.xlu0 %1760 }
 0x988   :  { %v1832_v40 = vpop.f32.mrb[14].mxu0  ;;  %v1903_v41 = vpop.f32.mrb[14].mxu1 }
 0x989   :  { %v1833_v42 = vadd.f32 %v1832_v40, %v1761_v39  ;;  %v1904_v43 = vadd.f32 %v1903_v41, %v1761_v39  ;;  %v1834_v44 = vpop.f32.mrb[15].mxu0  ;;  %v1905_v45 = vpop.f32.mrb[15].mxu1 }
 0x98a   :  { %v1835_v46 = vadd.f32 %v1834_v44, %v1761_v39  ;;  %v1906_v47 = vadd.f32 %v1905_v45, %v1761_v39 }
 0x98b   :  { %v1908_v48 = vmax.f32 %v1833_v42, 0.0  ;;  %v1910_v52 = vmax.f32 %v1904_v43, 0.0 }
 0x98c   :  { %v1909_v53 = vmax.f32 %v1835_v46, 0.0  ;;  %v1911_v54 = vmax.f32 %v1906_v47, 0.0 }
 0x98e   :  { %v3204_v55 = vpack.i.bf16 %v1911_v54, %v1910_v52  ;;  %v3199_v56 = vpack.i.bf16 %v1909_v53, %v1908_v48 }
 0x990   :  { %3205 = vrot.lane.b32.xlu0 %v3204_v55, %s3342_s9  ;;  %3200 = vrot.lane.b32.xlu1 %v3199_v56, %s3342_s9 }
 0x994   :  { %3215 = vrot.lane.b32.xlu0 %v3204_v55, %s3343_s10  ;;  %3210 = vrot.lane.b32.xlu1 %v3199_v56, %s3343_s10 }
 0x998   :  { %3225 = vrot.lane.b32.xlu0 %v3204_v55, %s3344_s11  ;;  %3220 = vrot.lane.b32.xlu1 %v3199_v56, %s3344_s11 }
 0x99c   :  { %3235 = vrot.lane.b32.xlu0 %v3204_v55, %s3345_s12  ;;  %3230 = vrot.lane.b32.xlu1 %v3199_v56, %s3345_s12 }
 0x9a0   :  { %3245 = vrot.lane.b32.xlu0 %v3204_v55, %s3346_s13  ;;  %3240 = vrot.lane.b32.xlu1 %v3199_v56, %s3346_s13 }
 0x9a4   :  { %3255 = vrot.lane.b32.xlu0 %v3204_v55, %s3347_s14  ;;  %3250 = vrot.lane.b32.xlu1 %v3199_v56, %s3347_s14 }
 0x9a8   :  { %3265 = vrot.lane.b32.xlu0 %v3204_v55, %s3348_s15  ;;  %3260 = vrot.lane.b32.xlu1 %v3199_v56, %s3348_s15 }
 0x9ac   :  { %1998 = vrot.lane.b32.xlu0 %v1909_v53, %s3349_s16  ;;  %1996 = vrot.lane.b32.xlu1 %v1908_v48, %s3349_s16 }
 0x9b0   :  { %2002 = vrot.lane.b32.xlu0 %v1911_v54, %s3349_s16  ;;  %2000 = vrot.lane.b32.xlu1 %v1910_v52, %s3349_s16 }
 0x9b4   :  { %2014 = vperm.xlu1 %2848, %v2475_v57  }
 0xa02   :  { %v3206_v58 = vpop.permute.xlu0 %3205  ;;  %v3201_v59 = vpop.permute.xlu1 %3200 }
 0xa03   :  { %v3208_v60 = vunpack.i.h.bf16 %v3206_v58  ;;  %v3207_v61 = vunpack.i.l.bf16 %v3206_v58  ;;  %v3203_v62 = vunpack.i.h.bf16 %v3201_v59  ;;  %v3202_v63 = vunpack.i.l.bf16 %v3201_v59 }
 0xa05   :  { %v1920_v0 = vsel %vm205_vm4, %v3207_v61, %v3208_v60  ;;  %v1922_v1 = vsel %vm205_vm4, %v3202_v63, %v3203_v62  ;;  %v1921_v4 = vsel %vm205_vm4, %v3203_v62, %v3207_v61  ;;  %v1923_v5 = vsel %vm205_vm4, %v3208_v60, %v3202_v63 }
 0xa06   :  { %v2720_v6 = vpack.c.bf16 %v1920_v0, %v1910_v52  ;;  %v2704_v7 = vpack.c.bf16 %v1922_v1, %v1908_v48  ;;  %v3216_v8 = vpop.permute.xlu0 %3215  ;;  %v3211_v9 = vpop.permute.xlu1 %3210  ;;  %v2702_v10 = vpack.c.bf16 %v1921_v4, %v1909_v53  ;;  %v2718_v11 = vpack.c.bf16 %v1923_v5, %v1911_v54 }
 0xa07   :  { %v3218_v12 = vunpack.i.h.bf16 %v3216_v8  ;;  %v3217_v13 = vunpack.i.l.bf16 %v3216_v8  ;;  %v3213_v14 = vunpack.i.h.bf16 %v3211_v9  ;;  %v3212_v15 = vunpack.i.l.bf16 %v3211_v9 }
 0xa08   :  { %2703 = vmatprep.subr.bf16.mxu0 %v2702_v10  ;;  %2719 = vmatprep.subr.bf16.mxu1 %v2718_v11 }
 0xa09   :  { %2705 = vmatpush1.bf16.msra.mxu0 %v2704_v7  ;;  %2721 = vmatpush1.bf16.msra.mxu1 %v2720_v6  ;;  %v1932_v22 = vsel %vm218_vm5, %v3217_v13, %v3218_v12  ;;  %v1934_v23 = vsel %vm218_vm5, %v3212_v15, %v3213_v14  ;;  %v1933_v24 = vsel %vm218_vm5, %v3213_v14, %v3217_v13 }
 0xa0a   :  { %v3226_v16 = vpop.permute.xlu0 %3225  ;;  %v3221_v17 = vpop.permute.xlu1 %3220  ;;  %v1935_v25 = vsel %vm218_vm5, %v3218_v12, %v3212_v15 }
 0xa0b   :  { %v3228_v18 = vunpack.i.h.bf16 %v3226_v16  ;;  %v3227_v19 = vunpack.i.l.bf16 %v3226_v16  ;;  %v3223_v20 = vunpack.i.h.bf16 %v3221_v17  ;;  %v3222_v21 = vunpack.i.l.bf16 %v3221_v17 }
 0xa0d   :  { %v1944_v26 = vsel %vm231_vm6, %v3227_v19, %v3228_v18  ;;  %v1946_v27 = vsel %vm231_vm6, %v3222_v21, %v3223_v20  ;;  %v1945_v28 = vsel %vm231_vm6, %v3223_v20, %v3227_v19  ;;  %v1947_v29 = vsel %vm231_vm6, %v3228_v18, %v3222_v21 }
 0xa0e   :  { %v2724_v30 = vpack.c.bf16 %v1944_v26, %v1932_v22  ;;  %v2708_v31 = vpack.c.bf16 %v1946_v27, %v1934_v23  ;;  %v3236_v32 = vpop.permute.xlu0 %3235  ;;  %v3231_v33 = vpop.permute.xlu1 %3230  ;;  %v2706_v35 = vpack.c.bf16 %v1945_v28, %v1933_v24  ;;  %v2722_v36 = vpack.c.bf16 %v1947_v29, %v1935_v25 }
 0xa0f   :  { %v3238_v37 = vunpack.i.h.bf16 %v3236_v32  ;;  %v3237_v38 = vunpack.i.l.bf16 %v3236_v32  ;;  %v3233_v39 = vunpack.i.h.bf16 %v3231_v33  ;;  %v3232_v40 = vunpack.i.l.bf16 %v3231_v33 }
 0xa10   :  { %2707 = vmatprep.subr.bf16.mxu0 %v2706_v35  ;;  %2723 = vmatprep.subr.bf16.mxu1 %v2722_v36 }
 0xa11   :  { %2709 = vmatpush1.bf16.msra.mxu0 %v2708_v31  ;;  %2725 = vmatpush1.bf16.msra.mxu1 %v2724_v30  ;;  %v1956_v47 = vsel %vm244_vm7, %v3237_v38, %v3238_v37  ;;  %v1958_v48 = vsel %vm244_vm7, %v3232_v40, %v3233_v39  ;;  %v1957_v52 = vsel %vm244_vm7, %v3233_v39, %v3237_v38  ;;  %v2474_v31 = vld [vmem:[%s4248_s2 + $0x30] sm:$0xff] }
 0xa12   :  { %v3246_v41 = vpop.permute.xlu0 %3245  ;;  %v3241_v42 = vpop.permute.xlu1 %3240  ;;  %v1959_v53 = vsel %vm244_vm7, %v3238_v37, %v3232_v40 }
 0xa13   :  { %v3248_v43 = vunpack.i.h.bf16 %v3246_v41  ;;  %v3247_v44 = vunpack.i.l.bf16 %v3246_v41  ;;  %v3243_v45 = vunpack.i.h.bf16 %v3241_v42  ;;  %v3242_v46 = vunpack.i.l.bf16 %v3241_v42 }
 0xa15   :  { %v1968_v54 = vsel %vm257_vm8, %v3247_v44, %v3248_v43  ;;  %v1970_v55 = vsel %vm257_vm8, %v3242_v46, %v3243_v45  ;;  %v1969_v56 = vsel %vm257_vm8, %v3243_v45, %v3247_v44  ;;  %v1971_v57 = vsel %vm257_vm8, %v3248_v43, %v3242_v46 }
 0xa16   :  { %v2728_v58 = vpack.c.bf16 %v1968_v54, %v1956_v47  ;;  %v2712_v59 = vpack.c.bf16 %v1970_v55, %v1958_v48  ;;  %v3256_v60 = vpop.permute.xlu0 %3255  ;;  %v3251_v61 = vpop.permute.xlu1 %3250  ;;  %v2710_v62 = vpack.c.bf16 %v1969_v56, %v1957_v52  ;;  %v2726_v63 = vpack.c.bf16 %v1971_v57, %v1959_v53  ;;  %v2447_v52 = vld [vmem:[%s4246_s3 + $0x20] sm:$0xff] }
 0xa17   :  { %v3258_v0 = vunpack.i.h.bf16 %v3256_v60  ;;  %v3257_v1 = vunpack.i.l.bf16 %v3256_v60  ;;  %v3253_v4 = vunpack.i.h.bf16 %v3251_v61  ;;  %v3252_v5 = vunpack.i.l.bf16 %v3251_v61 }
 0xa18   :  { %2711 = vmatprep.subr.bf16.mxu0 %v2710_v62  ;;  %2727 = vmatprep.subr.bf16.mxu1 %v2726_v63 }
 0xa19   :  { %2713 = vmatpush1.bf16.msra.mxu0 %v2712_v59  ;;  %2729 = vmatpush1.bf16.msra.mxu1 %v2728_v58  ;;  %v1980_v12 = vsel %vm270_vm9, %v3257_v1, %v3258_v0  ;;  %v1982_v13 = vsel %vm270_vm9, %v3252_v5, %v3253_v4  ;;  %v1981_v14 = vsel %vm270_vm9, %v3253_v4, %v3257_v1 }
 0xa1a   :  { %v3266_v6 = vpop.permute.xlu0 %3265  ;;  %v3261_v7 = vpop.permute.xlu1 %3260  ;;  %v1983_v15 = vsel %vm270_vm9, %v3258_v0, %v3252_v5 }
 0xa1b   :  { %v3268_v8 = vunpack.i.h.bf16 %v3266_v6  ;;  %v3267_v9 = vunpack.i.l.bf16 %v3266_v6  ;;  %v3263_v10 = vunpack.i.h.bf16 %v3261_v7  ;;  %v3262_v11 = vunpack.i.l.bf16 %v3261_v7 }
 0xa1d   :  { %v1992_v16 = vsel %vm283_vm10, %v3267_v9, %v3268_v8  ;;  %v1994_v17 = vsel %vm283_vm10, %v3262_v11, %v3263_v10  ;;  %v1993_v18 = vsel %vm283_vm10, %v3263_v10, %v3267_v9  ;;  %v1995_v19 = vsel %vm283_vm10, %v3268_v8, %v3262_v11 }
 0xa1e   :  { %v2732_v20 = vpack.c.bf16 %v1992_v16, %v1980_v12  ;;  %v2716_v21 = vpack.c.bf16 %v1994_v17, %v1982_v13  ;;  %v1999_v22 = vpop.permute.xlu0 %1998  ;;  %v1997_v23 = vpop.permute.xlu1 %1996  ;;  %v2714_v24 = vpack.c.bf16 %v1993_v18, %v1981_v14  ;;  %v2730_v25 = vpack.c.bf16 %v1995_v19, %v1983_v15 }
 0xa1f   :  { %v2006_v32 = vsel %vm296_vm11, %v1997_v23, %v1999_v22 }
 0xa20   :  { %2715 = vmatprep.subr.bf16.mxu0 %v2714_v24  ;;  %2731 = vmatprep.subr.bf16.mxu1 %v2730_v25 }
 0xa21   :  { %2717 = vmatpush1.bf16.msra.mxu0 %v2716_v21  ;;  %2733 = vmatpush1.bf16.msra.mxu1 %v2732_v20 }
 0xa22   :  { %v2003_v26 = vpop.permute.xlu0 %2002  ;;  %v2001_v27 = vpop.permute.xlu1 %2000 }
 0xa23   :  { %v2004_v28 = vsel %vm296_vm11, %v2001_v27, %v2003_v26  ;;  %v2005_v29 = vsel %vm296_vm11, %v1999_v22, %v2001_v27  ;;  %v2007_v30 = vsel %vm296_vm11, %v2003_v26, %v1997_v23 }
 0xa24   :  { %2036 = vmatprep.subr.mxu0 %v2005_v29  ;;  %2107 = vmatprep.subr.mxu1 %v2007_v30 }
 0xa25   :  { %2037 = vmatpush1.msra.mxu0 %v2006_v32  ;;  %2108 = vmatpush1.msra.mxu1 %v2004_v28 }
 0xa26   :  { %2476 = vmatmul.mubr.msk.f32.vlgmr.msra.gmra.mrb[16].mxu0 %vm309_vm12, %v2474_v31  ;;  %2477 = vmatmul.mubr.msk.f32.vlgmr.msra.gmra.mrb[16].mxu1 %vm309_vm12, %v2474_v31 }
 0xa27   :  { %2338 = vmatprep.mubr.f32.mxu0 %v3340_v3  ;;  %2409 = vmatprep.mubr.f32.mxu1 %v3340_v3  ;;  %v2479_v3 = vld [vmem:[%s4246_s3 + $0x48] sm:$0xff] }
 0xa33   :  { %v2015_v33 = vpop.permute.xlu1 %2014 }
 0xaf9   :  { %v2086_v35 = vpop.f32.mrb[16].mxu0  ;;  %v2157_v36 = vpop.f32.mrb[16].mxu1 }
 0xafa   :  { %v2087_v37 = vadd.f32 %v2086_v35, %v2015_v33  ;;  %v2158_v38 = vadd.f32 %v2157_v36, %v2015_v33  ;;  %v2088_v39 = vpop.f32.mrb[17].mxu0  ;;  %v2159_v40 = vpop.f32.mrb[17].mxu1 }
 0xafb   :  { %v2089_v41 = vadd.f32 %v2088_v39, %v2015_v33  ;;  %v2160_v42 = vadd.f32 %v2159_v40, %v2015_v33 }
 0xafc   :  { %v2162_v43 = vmax.f32 %v2087_v37, 0.0  ;;  %v2164_v44 = vmax.f32 %v2158_v38, 0.0 }
 0xafd   :  { %v2163_v45 = vmax.f32 %v2089_v41, 0.0  ;;  %v2165_v46 = vmax.f32 %v2160_v42, 0.0 }
 0xaff   :  { %v3274_v47 = vpack.i.bf16 %v2165_v46, %v2164_v44  ;;  %v3269_v48 = vpack.i.bf16 %v2163_v45, %v2162_v43 }
 0xb01   :  { %3275 = vrot.lane.b32.xlu1 %v3274_v47, %s3342_s9  ;;  %3270 = vrot.lane.b32.xlu0 %v3269_v48, %s3342_s9 }
 0xb05   :  { %3285 = vrot.lane.b32.xlu1 %v3274_v47, %s3343_s10  ;;  %3280 = vrot.lane.b32.xlu0 %v3269_v48, %s3343_s10 }
 0xb09   :  { %3295 = vrot.lane.b32.xlu1 %v3274_v47, %s3344_s11  ;;  %3290 = vrot.lane.b32.xlu0 %v3269_v48, %s3344_s11 }
 0xb0d   :  { %3305 = vrot.lane.b32.xlu1 %v3274_v47, %s3345_s12  ;;  %3300 = vrot.lane.b32.xlu0 %v3269_v48, %s3345_s12 }
 0xb11   :  { %3315 = vrot.lane.b32.xlu1 %v3274_v47, %s3346_s13  ;;  %3310 = vrot.lane.b32.xlu0 %v3269_v48, %s3346_s13 }
 0xb15   :  { %3325 = vrot.lane.b32.xlu1 %v3274_v47, %s3347_s14  ;;  %3320 = vrot.lane.b32.xlu0 %v3269_v48, %s3347_s14 }
 0xb19   :  { %3335 = vrot.lane.b32.xlu1 %v3274_v47, %s3348_s15  ;;  %3330 = vrot.lane.b32.xlu0 %v3269_v48, %s3348_s15 }
 0xb1d   :  { %2252 = vrot.lane.b32.xlu1 %v2163_v45, %s3349_s16  ;;  %2250 = vrot.lane.b32.xlu0 %v2162_v43, %s3349_s16 }
 0xb21   :  { %2256 = vrot.lane.b32.xlu1 %v2165_v46, %s3349_s16  ;;  %2254 = vrot.lane.b32.xlu0 %v2164_v44, %s3349_s16 }
 0xb25   :  { %2268 = vperm.xlu1 %2848, %v2479_v3   ;;  %1069 = vperm.xlu0 %2777, %v2447_v52  }
 0xb73   :  { %v3276_v53 = vpop.permute.xlu1 %3275  ;;  %v3271_v54 = vpop.permute.xlu0 %3270 }
 0xb74   :  { %v3278_v55 = vunpack.i.h.bf16 %v3276_v53  ;;  %v3277_v56 = vunpack.i.l.bf16 %v3276_v53  ;;  %v3273_v57 = vunpack.i.h.bf16 %v3271_v54  ;;  %v3272_v58 = vunpack.i.l.bf16 %v3271_v54 }
 0xb76   :  { %v2174_v59 = vsel %vm205_vm4, %v3277_v56, %v3278_v55  ;;  %v2176_v60 = vsel %vm205_vm4, %v3272_v58, %v3273_v57  ;;  %v2175_v61 = vsel %vm205_vm4, %v3273_v57, %v3277_v56  ;;  %v2177_v62 = vsel %vm205_vm4, %v3278_v55, %v3272_v58 }
 0xb77   :  { %v2752_v63 = vpack.c.bf16 %v2174_v59, %v2164_v44  ;;  %v2736_v0 = vpack.c.bf16 %v2176_v60, %v2162_v43  ;;  %v3286_v1 = vpop.permute.xlu1 %3285  ;;  %v3281_v4 = vpop.permute.xlu0 %3280  ;;  %v2734_v5 = vpack.c.bf16 %v2175_v61, %v2163_v45  ;;  %v2750_v6 = vpack.c.bf16 %v2177_v62, %v2165_v46 }
 0xb78   :  { %v3288_v7 = vunpack.i.h.bf16 %v3286_v1  ;;  %v3287_v8 = vunpack.i.l.bf16 %v3286_v1  ;;  %v3283_v9 = vunpack.i.h.bf16 %v3281_v4  ;;  %v3282_v10 = vunpack.i.l.bf16 %v3281_v4 }
 0xb79   :  { %2735 = vmatprep.subr.bf16.mxu0 %v2734_v5  ;;  %2751 = vmatprep.subr.bf16.mxu1 %v2750_v6 }
 0xb7a   :  { %2737 = vmatpush1.bf16.msra.mxu0 %v2736_v0  ;;  %2753 = vmatpush1.bf16.msra.mxu1 %v2752_v63  ;;  %v2186_v17 = vsel %vm218_vm5, %v3287_v8, %v3288_v7  ;;  %v2188_v18 = vsel %vm218_vm5, %v3282_v10, %v3283_v9  ;;  %v2187_v19 = vsel %vm218_vm5, %v3283_v9, %v3287_v8 }
 0xb7b   :  { %v3296_v11 = vpop.permute.xlu1 %3295  ;;  %v3291_v12 = vpop.permute.xlu0 %3290  ;;  %v2189_v20 = vsel %vm218_vm5, %v3288_v7, %v3282_v10 }
 0xb7c   :  { %v3298_v13 = vunpack.i.h.bf16 %v3296_v11  ;;  %v3297_v14 = vunpack.i.l.bf16 %v3296_v11  ;;  %v3293_v15 = vunpack.i.h.bf16 %v3291_v12  ;;  %v3292_v16 = vunpack.i.l.bf16 %v3291_v12 }
 0xb7e   :  { %v2198_v21 = vsel %vm231_vm6, %v3297_v14, %v3298_v13  ;;  %v2200_v22 = vsel %vm231_vm6, %v3292_v16, %v3293_v15  ;;  %v2199_v23 = vsel %vm231_vm6, %v3293_v15, %v3297_v14  ;;  %v2201_v24 = vsel %vm231_vm6, %v3298_v13, %v3292_v16 }
 0xb7f   :  { %v2756_v25 = vpack.c.bf16 %v2198_v21, %v2186_v17  ;;  %v2740_v26 = vpack.c.bf16 %v2200_v22, %v2188_v18  ;;  %v3306_v27 = vpop.permute.xlu1 %3305  ;;  %v3301_v28 = vpop.permute.xlu0 %3300  ;;  %v2738_v29 = vpack.c.bf16 %v2199_v23, %v2187_v19  ;;  %v2754_v30 = vpack.c.bf16 %v2201_v24, %v2189_v20 }
 0xb80   :  { %v3308_v31 = vunpack.i.h.bf16 %v3306_v27  ;;  %v3307_v32 = vunpack.i.l.bf16 %v3306_v27  ;;  %v3303_v33 = vunpack.i.h.bf16 %v3301_v28  ;;  %v3302_v35 = vunpack.i.l.bf16 %v3301_v28 }
 0xb81   :  { %2739 = vmatprep.subr.bf16.mxu0 %v2738_v29  ;;  %2755 = vmatprep.subr.bf16.mxu1 %v2754_v30 }
 0xb82   :  { %2741 = vmatpush1.bf16.msra.mxu0 %v2740_v26  ;;  %2757 = vmatpush1.bf16.msra.mxu1 %v2756_v25  ;;  %v2210_v42 = vsel %vm244_vm7, %v3307_v32, %v3308_v31  ;;  %v2212_v43 = vsel %vm244_vm7, %v3302_v35, %v3303_v33  ;;  %v2211_v44 = vsel %vm244_vm7, %v3303_v33, %v3307_v32  ;;  %v2478_v25 = vld [vmem:[%s4248_s2 + $0x38] sm:$0xff] }
 0xb83   :  { %v3316_v36 = vpop.permute.xlu1 %3315  ;;  %v3311_v37 = vpop.permute.xlu0 %3310  ;;  %v2213_v45 = vsel %vm244_vm7, %v3308_v31, %v3302_v35 }
 0xb84   :  { %v3318_v38 = vunpack.i.h.bf16 %v3316_v36  ;;  %v3317_v39 = vunpack.i.l.bf16 %v3316_v36  ;;  %v3313_v40 = vunpack.i.h.bf16 %v3311_v37  ;;  %v3312_v41 = vunpack.i.l.bf16 %v3311_v37 }
 0xb86   :  { %v2222_v46 = vsel %vm257_vm8, %v3317_v39, %v3318_v38  ;;  %v2224_v47 = vsel %vm257_vm8, %v3312_v41, %v3313_v40  ;;  %v2223_v48 = vsel %vm257_vm8, %v3313_v40, %v3317_v39  ;;  %v2225_v3 = vsel %vm257_vm8, %v3318_v38, %v3312_v41 }
 0xb87   :  { %v2760_v52 = vpack.c.bf16 %v2222_v46, %v2210_v42  ;;  %v2744_v53 = vpack.c.bf16 %v2224_v47, %v2212_v43  ;;  %v3326_v54 = vpop.permute.xlu1 %3325  ;;  %v3321_v55 = vpop.permute.xlu0 %3320  ;;  %v2742_v56 = vpack.c.bf16 %v2223_v48, %v2211_v44  ;;  %v2758_v57 = vpack.c.bf16 %v2225_v3, %v2213_v45 }
 0xb88   :  { %v3328_v58 = vunpack.i.h.bf16 %v3326_v54  ;;  %v3327_v59 = vunpack.i.l.bf16 %v3326_v54  ;;  %v3323_v60 = vunpack.i.h.bf16 %v3321_v55  ;;  %v3322_v61 = vunpack.i.l.bf16 %v3321_v55 }
 0xb89   :  { %2743 = vmatprep.subr.bf16.mxu0 %v2742_v56  ;;  %2759 = vmatprep.subr.bf16.mxu1 %v2758_v57 }
 0xb8a   :  { %2745 = vmatpush1.bf16.msra.mxu0 %v2744_v53  ;;  %2761 = vmatpush1.bf16.msra.mxu1 %v2760_v52  ;;  %v2234_v6 = vsel %vm270_vm9, %v3327_v59, %v3328_v58  ;;  %v2236_v7 = vsel %vm270_vm9, %v3322_v61, %v3323_v60  ;;  %v2235_v8 = vsel %vm270_vm9, %v3323_v60, %v3327_v59 }
 0xb8b   :  { %v3336_v62 = vpop.permute.xlu1 %3335  ;;  %v3331_v63 = vpop.permute.xlu0 %3330  ;;  %v2237_v9 = vsel %vm270_vm9, %v3328_v58, %v3322_v61 }
 0xb8c   :  { %v3338_v0 = vunpack.i.h.bf16 %v3336_v62  ;;  %v3337_v1 = vunpack.i.l.bf16 %v3336_v62  ;;  %v3333_v4 = vunpack.i.h.bf16 %v3331_v63  ;;  %v3332_v5 = vunpack.i.l.bf16 %v3331_v63 }
 0xb8e   :  { %v2246_v10 = vsel %vm283_vm10, %v3337_v1, %v3338_v0  ;;  %v2248_v11 = vsel %vm283_vm10, %v3332_v5, %v3333_v4  ;;  %v2247_v12 = vsel %vm283_vm10, %v3333_v4, %v3337_v1  ;;  %v2249_v13 = vsel %vm283_vm10, %v3338_v0, %v3332_v5 }
 0xb8f   :  { %v2764_v14 = vpack.c.bf16 %v2246_v10, %v2234_v6  ;;  %v2748_v15 = vpack.c.bf16 %v2248_v11, %v2236_v7  ;;  %v2253_v16 = vpop.permute.xlu1 %2252  ;;  %v2251_v17 = vpop.permute.xlu0 %2250  ;;  %v2746_v18 = vpack.c.bf16 %v2247_v12, %v2235_v8  ;;  %v2762_v19 = vpack.c.bf16 %v2249_v13, %v2237_v9 }
 0xb90   :  { %v2260_v26 = vsel %vm296_vm11, %v2251_v17, %v2253_v16 }
 0xb91   :  { %2747 = vmatprep.subr.bf16.mxu0 %v2746_v18  ;;  %2763 = vmatprep.subr.bf16.mxu1 %v2762_v19 }
 0xb92   :  { %2749 = vmatpush1.bf16.msra.mxu0 %v2748_v15  ;;  %2765 = vmatpush1.bf16.msra.mxu1 %v2764_v14 }
 0xb93   :  { %v2257_v20 = vpop.permute.xlu1 %2256  ;;  %v2255_v21 = vpop.permute.xlu0 %2254 }
 0xb94   :  { %v2258_v22 = vsel %vm296_vm11, %v2255_v21, %v2257_v20  ;;  %v2259_v23 = vsel %vm296_vm11, %v2253_v16, %v2255_v21  ;;  %v2261_v24 = vsel %vm296_vm11, %v2257_v20, %v2251_v17 }
 0xb95   :  { %2290 = vmatprep.subr.mxu0 %v2259_v23  ;;  %2361 = vmatprep.subr.mxu1 %v2261_v24 }
 0xb96   :  { %2291 = vmatpush1.msra.mxu0 %v2260_v26  ;;  %2362 = vmatpush1.msra.mxu1 %v2258_v22 }
 0xb97   :  { %2480 = vmatmul.mubr.msk.f32.vlgmr.msra.gmra.mrb[18].mxu0 %vm309_vm12, %v2478_v25  ;;  %2481 = vmatmul.mubr.msk.f32.vlgmr.msra.gmra.mrb[18].mxu1 %vm309_vm12, %v2478_v25 }
 0xba4   :  { %v1070_v27 = vpop.permute.xlu0 %1069 }
 0xba5   :  { %v1142_v28 = vadd.f32 %v3840_v49, %v1070_v27  ;;  %v1144_v29 = vadd.f32 %v3844_v51, %v1070_v27  ;;  %v1213_v30 = vadd.f32 %v3842_v50, %v1070_v27  ;;  %v1215_v31 = vadd.f32 %v3846_v2, %v1070_v27  ;;  %v2269_v49 = vpop.permute.xlu1 %2268 }
 0xba7   :  { %v1217_v32 = vmax.f32 %v1142_v28, 0.0  ;;  %v1218_v34 = vmax.f32 %v1144_v29, 0.0  ;;  %v1219_v33 = vmax.f32 %v1213_v30, 0.0  ;;  %v1220_v35 = vmax.f32 %v1215_v31, 0.0 }
 0xba9   :  { %1221 = vst [vmem:[%s4249_s4] sm:$0xff] %v1217_v32  ;;  %1222 = vst [vmem:[%s4249_s4 + $0x8] sm:$0xff] %v1218_v34 }
 0xbaa   :  { %1223 = vst [vmem:[%s4249_s4 + $0x10] sm:$0xff] %v1219_v33  ;;  %1224 = vst [vmem:[%s4249_s4 + $0x18] sm:$0xff] %v1220_v35 }
 0xc6a   :  { %v2340_v50 = vpop.f32.mrb[18].mxu0  ;;  %v2411_v51 = vpop.f32.mrb[18].mxu1 }
 0xc6b   :  { %v2341_v2 = vadd.f32 %v2340_v50, %v2269_v49  ;;  %v2412_v36 = vadd.f32 %v2411_v51, %v2269_v49  ;;  %v2342_v37 = vpop.f32.mrb[19].mxu0  ;;  %v2413_v38 = vpop.f32.mrb[19].mxu1 }
 0xc6c   :  { %v2343_v39 = vadd.f32 %v2342_v37, %v2269_v49  ;;  %v2414_v40 = vadd.f32 %v2413_v38, %v2269_v49 }
 0xc6d   :  { %v2416_v41 = vmax.f32 %v2341_v2, 0.0  ;;  %v2418_v42 = vmax.f32 %v2412_v36, 0.0 }
 0xc6e   :  { %v2417_v43 = vmax.f32 %v2343_v39, 0.0  ;;  %v2419_v44 = vmax.f32 %v2414_v40, 0.0 }
 0xc6f   :  { %2482 = vst [vmem:[%s4249_s4 + $0x20] sm:$0xff] %v2416_v41  ;;  %2484 = vst [vmem:[%s4249_s4 + $0x30] sm:$0xff] %v2418_v42 }
 0xc70   :  { %2483 = vst [vmem:[%s4249_s4 + $0x28] sm:$0xff] %v2417_v43  ;;  %2485 = vst [vmem:[%s4249_s4 + $0x38] sm:$0xff] %v2419_v44 }

</bundles_post_ra>
